<compile_context>
chip_gen: v7x
topology: tpu7x:2x2x1
jax: 0.10.0
libtpu: 0.0.40
codegen_flags: <defaults>
</compile_context>

<pallas_src>
import functools
import math

import jax
import jax.numpy as jnp
from jax.experimental import pallas as pl
from jax.experimental.pallas import tpu as pltpu


def _layernorm(x, gamma, beta, eps):
    # x: [N, D]; gamma/beta: [1, D]; LayerNorm over last dim (biased variance).
    mean = jnp.mean(x, axis=-1, keepdims=True)
    var = jnp.mean(jnp.square(x - mean), axis=-1, keepdims=True)
    return (x - mean) * jax.lax.rsqrt(var + eps) * gamma + beta


def encoder_stack_kernel(
    x_ref,
    wqkv_ref, bqkv_ref,
    wo_ref, bo_ref,
    lng_ref, lnb_ref,
    w1_ref, b1_ref,
    w2_ref, b2_ref,
    o_ref,
    x_scr,
    *, num_heads: int, batch_block: int, seq_len: int, eps: float = 1e-6,
):
    # grid = (batch_blocks, num_layers); layer axis is the sequential carry.
    layer = pl.program_id(1)
    Bb, L, H = batch_block, seq_len, num_heads
    N = Bb * L

    # First layer of this batch block: load the resident input slab into the
    # f32 VMEM carry.
    @pl.when(layer == 0)
    def _():
        x_scr[...] = x_ref[...].astype(jnp.float32)

    x = x_scr[...]                                   # [N, D] f32 (carried)
    D = x.shape[-1]
    dh = D // H
    mm = wqkv_ref.dtype                              # matmul dtype (bf16 or f32)

    # ---- fused QKV projection (1/sqrt(dh) already folded into Q cols) -------
    qkv = jnp.dot(x.astype(mm), wqkv_ref[0],
                  preferred_element_type=jnp.float32) + bqkv_ref[0]   # [N, 3D]
    q, k, v = qkv[:, :D], qkv[:, D:2 * D], qkv[:, 2 * D:]

    # ---- (batch, head)-batched attention, no mask ----------------------------
    # Repack [N, D] -> [H*Bb, L, dh]; each (head, batch) pair is an independent
    # dot_general batch, so no block-diagonal mask and no B x wasted FLOPs.
    # TODO(synk): a single pltpu.einshape relayout could replace the per-head
    # slice+reshape+concat once its equation form is validated for this layout.
    def split_heads(t):
        return jnp.concatenate(
            [t[:, h * dh:(h + 1) * dh].reshape(Bb, L, dh) for h in range(H)],
            axis=0)                                  # [H*Bb, L, dh]

    q3, k3, v3 = split_heads(q), split_heads(k), split_heads(v)

    s = jnp.einsum('bqd,bkd->bqk', q3.astype(mm), k3.astype(mm),
                   preferred_element_type=jnp.float32)            # [H*Bb, L, L]
    s = s - jnp.max(s, axis=-1, keepdims=True)
    p = jnp.exp(s)
    p = p * pl.reciprocal(jnp.sum(p, axis=-1, keepdims=True), approx=True)

    ctx = jnp.einsum('bqk,bkd->bqd', p.astype(mm), v3.astype(mm),
                     preferred_element_type=jnp.float32)          # [H*Bb, L, dh]
    # merge heads back: [H*Bb, L, dh] -> [N, D]
    attn = jnp.concatenate(
        [ctx[h * Bb:(h + 1) * Bb].reshape(N, dh) for h in range(H)], axis=1)

    attn_out = jnp.dot(attn.astype(mm), wo_ref[0],
                       preferred_element_type=jnp.float32) + bo_ref[0]
    # TODO(synk): dropout is identity (eval/inference mode); no RNG masking.

    # ---- residual + LayerNorm 1 ----------------------------------------------
    g, b = lng_ref[0], lnb_ref[0]
    out1 = _layernorm(x + attn_out, g, b, eps)

    # ---- FFN ------------------------------------------------------------------
    h1 = jnp.dot(out1.astype(mm), w1_ref[0],
                 preferred_element_type=jnp.float32) + b1_ref[0]
    h1 = jnp.maximum(h1, 0.0)
    ffn = jnp.dot(h1.astype(mm), w2_ref[0],
                  preferred_element_type=jnp.float32) + b2_ref[0]

    # ---- residual + LayerNorm 2 (same LN params, as in the PyTorch module) ----
    out2 = _layernorm(out1 + ffn, g, b, eps)

    # Carry for the next layer; last layer flushes the resident output block.
    x_scr[...] = out2

    @pl.when(layer == pl.num_programs(1) - 1)
    def _():
        # TODO(synk): D=32 (<128 lanes) -> one masked vst at the very end;
        # padding D to 128 at the model level would change semantics.
        o_ref[...] = out2.astype(o_ref.dtype)


def encoder_stack(x, params, num_heads, *,
                  matmul_dtype=jnp.bfloat16,
                  batch_blocks=1,
                  vmem_limit_bytes=64 * 1024 * 1024):
    """All encoder blocks in one pallas_call with a resident VMEM activation."""
    B, L, D = x.shape
    num_layers = params["wqkv"].shape[0]
    F = params["w1"].shape[-1]
    H = num_heads
    dh = D // H
    assert D % H == 0 and B % batch_blocks == 0
    Bb = B // batch_blocks
    N, Nb = B * L, Bb * L

    # Fold 1/sqrt(dh) into the Q columns of the fused QKV weight/bias (host side).
    scale = 1.0 / math.sqrt(dh)
    col_scale = jnp.concatenate(
        [jnp.full((D,), scale, jnp.float32), jnp.ones((2 * D,), jnp.float32)])
    wqkv = params["wqkv"] * col_scale
    bqkv = params["bqkv"] * col_scale

    def cast(w):  # matmul weights only; biases / LN params stay f32
        return w.astype(matmul_dtype)

    # Lane/sublane-friendly 2-D slab in/out (reshape is free in the wrapper).
    x2 = x.reshape(N, D)

    def wspec(shape):
        return pl.BlockSpec((1,) + shape, lambda b, l: (l, 0, 0))

    # Advisory cost estimate for XLA scheduling around the fused call.
    mm_bytes = jnp.dtype(matmul_dtype).itemsize
    flops = 2 * num_layers * N * D * (3 * D + 2 * L + D + 2 * F)
    transcendentals = num_layers * (B * H * L * (L + 1) + 2 * N)
    w_bytes = num_layers * (D * 3 * D + D * D + D * F + F * D) * mm_bytes
    b_bytes = num_layers * (3 * D + D + 2 * D + F + D) * 4
    bytes_accessed = 2 * N * D * x.dtype.itemsize + batch_blocks * (w_bytes + b_bytes)

    kernel = functools.partial(
        encoder_stack_kernel, num_heads=H, batch_block=Bb, seq_len=L)

    out2d = pl.pallas_call(
        kernel,
        out_shape=jax.ShapeDtypeStruct((N, D), x.dtype),
        grid_spec=pltpu.PrefetchScalarGridSpec(
            num_scalar_prefetch=0,
            grid=(batch_blocks, num_layers),
            in_specs=[
                pl.BlockSpec((Nb, D), lambda b, l: (b, 0)),     # x (resident per batch block)
                wspec((D, 3 * D)), wspec((1, 3 * D)),           # wqkv, bqkv
                wspec((D, D)), wspec((1, D)),                   # wo, bo
                wspec((1, D)), wspec((1, D)),                   # ln gamma, beta
                wspec((D, F)), wspec((1, F)),                   # w1, b1
                wspec((F, D)), wspec((1, D)),                   # w2, b2
            ],
            # Constant block index across the layer axis -> output resident in
            # VMEM, flushed to HBM once per batch block.
            out_specs=pl.BlockSpec((Nb, D), lambda b, l: (b, 0)),
            scratch_shapes=[pltpu.VMEM((Nb, D), jnp.float32)],
        ),
        compiler_params=pltpu.CompilerParams(
            dimension_semantics=("parallel", "arbitrary"),
            vmem_limit_bytes=vmem_limit_bytes),
        cost_estimate=pl.CostEstimate(
            flops=int(flops),
            transcendentals=int(transcendentals),
            bytes_accessed=int(bytes_accessed)),
    )(
        x2,
        cast(wqkv), bqkv,
        cast(params["wo"]), params["bo"],
        params["ln_g"], params["ln_b"],
        cast(params["w1"]), params["b1"],
        cast(params["w2"]), params["b2"],
    )
    return out2d.reshape(B, L, D)


def make_params(key, vocab_size, embedding_dim, max_length, num_layers, ff_dim):
    D, F = embedding_dim, ff_dim
    keys = jax.random.split(key, 2 + num_layers)
    s = 0.02
    wqkv, wo, w1, w2 = [], [], [], []
    for li in range(num_layers):
        lk = jax.random.split(keys[2 + li], 4)
        wqkv.append(s * jax.random.normal(lk[0], (D, 3 * D), jnp.float32))
        wo.append(s * jax.random.normal(lk[1], (D, D), jnp.float32))
        w1.append(s * jax.random.normal(lk[2], (D, F), jnp.float32))
        w2.append(s * jax.random.normal(lk[3], (F, D), jnp.float32))

    def zl(shape):
        return jnp.zeros((num_layers,) + shape, jnp.float32)

    return {
        "tok_emb": s * jax.random.normal(keys[0], (vocab_size, D), jnp.float32),
        "pos_emb": s * jax.random.normal(keys[1], (max_length, D), jnp.float32),
        "wqkv": jnp.stack(wqkv), "bqkv": zl((1, 3 * D)),
        "wo": jnp.stack(wo), "bo": zl((1, D)),
        "ln_g": jnp.ones((num_layers, 1, D), jnp.float32), "ln_b": zl((1, D)),
        "w1": jnp.stack(w1), "b1": zl((1, F)),
        "w2": jnp.stack(w2), "b2": zl((1, D)),
    }


def transformer_encoder(x_tokens, params, num_heads, *,
                        matmul_dtype=jnp.bfloat16, batch_blocks=1):
    # Token + position embedding (gather = glue, plain JAX).
    B, L = x_tokens.shape
    tok = jnp.take(params["tok_emb"], x_tokens, axis=0)        # [B, L, D]
    pos = params["pos_emb"][:L][None, :, :]                    # [1, L, D]
    x = tok + pos
    # All encoder blocks in a single fused Pallas kernel.
    return encoder_stack(x, params, num_heads,
                         matmul_dtype=matmul_dtype, batch_blocks=batch_blocks)


if __name__ == "__main__":
    # Small shapes: batch=2, seq=8, embed=32, heads=4, ff=64, 2 layers.
    B, L = 2, 8
    vocab_size, embedding_dim, max_length = 50, 32, 8
    num_layers, num_heads, ff_dim = 2, 4, 64

    key = jax.random.PRNGKey(0)
    pkey, xkey = jax.random.split(key)
    params = make_params(pkey, vocab_size, embedding_dim, max_length,
                         num_layers, ff_dim)
    x_tokens = jax.random.randint(xkey, (B, L), 0, vocab_size, dtype=jnp.int32)

    # Default bf16 matmuls (f32 accumulation / stats / residuals); pass
    # matmul_dtype=jnp.float32 to reproduce PyTorch f32 numerics exactly.
    out = transformer_encoder(x_tokens, params, num_heads,
                              matmul_dtype=jnp.bfloat16, batch_blocks=1)
    out = jax.block_until_ready(out)

    assert out.shape == (B, L, embedding_dim)
    assert bool(jnp.all(jnp.isfinite(out)))
    print("KERNEL_OK")
</pallas_src>

<mosaic_0001>
module attributes {stable_mosaic.version = 11 : i64} {
  func.func @encoder_stack_kernel(%arg0: i32, %arg1: i32, %arg2: memref<16x32xf32, #tpu.memory_space<vmem>>, %arg3: memref<1x32x96xbf16, #tpu.memory_space<vmem>>, %arg4: memref<1x1x96xf32, #tpu.memory_space<vmem>>, %arg5: memref<1x32x32xbf16, #tpu.memory_space<vmem>>, %arg6: memref<1x1x32xf32, #tpu.memory_space<vmem>>, %arg7: memref<1x1x32xf32, #tpu.memory_space<vmem>>, %arg8: memref<1x1x32xf32, #tpu.memory_space<vmem>>, %arg9: memref<1x32x64xbf16, #tpu.memory_space<vmem>>, %arg10: memref<1x1x64xf32, #tpu.memory_space<vmem>>, %arg11: memref<1x64x32xbf16, #tpu.memory_space<vmem>>, %arg12: memref<1x1x32xf32, #tpu.memory_space<vmem>>, %arg13: memref<16x32xf32, #tpu.memory_space<vmem>>, %arg14: memref<16x32xf32, #tpu.memory_space<vmem>>) attributes {dimension_semantics = [#tpu.dimension_semantics<parallel>, #tpu.dimension_semantics<arbitrary>], iteration_bounds = array<i64: 1, 2>, scalar_prefetch = 0 : i64, scratch_operands = 1 : i64, tpu.core_type = #tpu.core_type<tc>, window_params = [{transform_indices = @transform_0, window_bounds = array<i64: 16, 32>}, {transform_indices = @transform_1, window_bounds = array<i64: 1, 32, 96>}, {transform_indices = @transform_2, window_bounds = array<i64: 1, 1, 96>}, {transform_indices = @transform_3, window_bounds = array<i64: 1, 32, 32>}, {transform_indices = @transform_4, window_bounds = array<i64: 1, 1, 32>}, {transform_indices = @transform_5, window_bounds = array<i64: 1, 1, 32>}, {transform_indices = @transform_6, window_bounds = array<i64: 1, 1, 32>}, {transform_indices = @transform_7, window_bounds = array<i64: 1, 32, 64>}, {transform_indices = @transform_8, window_bounds = array<i64: 1, 1, 64>}, {transform_indices = @transform_9, window_bounds = array<i64: 1, 64, 32>}, {transform_indices = @transform_10, window_bounds = array<i64: 1, 1, 32>}, {transform_indices = @transform_11, window_bounds = array<i64: 16, 32>}]} {
    %c0_i32 = arith.constant 0 : i32
    %0 = arith.cmpi eq, %arg1, %c0_i32 : i32
    %1 = arith.extui %0 : i1 to i32
    %c0_i32_0 = arith.constant 0 : i32
    %2 = arith.cmpi ne, %1, %c0_i32_0 : i32
    scf.if %2 {
      %c0_53 = arith.constant 0 : index
      %c0_54 = arith.constant 0 : index
      %147 = vector.load %arg2[%c0_53, %c0_54] : memref<16x32xf32, #tpu.memory_space<vmem>>, vector<16x32xf32>
      %c0_55 = arith.constant 0 : index
      %c0_56 = arith.constant 0 : index
      %148 = vector.load %arg14[%c0_55, %c0_56] : memref<16x32xf32, #tpu.memory_space<vmem>>, vector<16x32xf32>
      tpu.vector_store %arg14[%c0_55, %c0_56], %147 {strides = array<i32>} : memref<16x32xf32, #tpu.memory_space<vmem>>, vector<16x32xf32>,
    } else {
    }
    %c0 = arith.constant 0 : index
    %c0_1 = arith.constant 0 : index
    %3 = vector.load %arg14[%c0, %c0_1] : memref<16x32xf32, #tpu.memory_space<vmem>>, vector<16x32xf32>
    %4 = arith.truncf %3 : vector<16x32xf32> to vector<16x32xbf16>
    %c0_2 = arith.constant 0 : index
    %c0_3 = arith.constant 0 : index
    %c0_4 = arith.constant 0 : index
    %5 = vector.load %arg3[%c0_2, %c0_3, %c0_4] : memref<1x32x96xbf16, #tpu.memory_space<vmem>>, vector<1x32x96xbf16>
    %6 = vector.shape_cast %5 : vector<1x32x96xbf16> to vector<32x96xbf16>
    %cst = arith.constant dense<0.000000e+00> : vector<16x96xf32>
    %7 = tpu.matmul %4, %6, %cst {dimension_numbers = #tpu.dot_dimension_numbers<[1], [0], [0], [1], [0, 0, 1, 1], [], []>} : vector<16x32xbf16>, vector<32x96xbf16>, vector<16x96xf32> -> vector<16x96xf32>
    %c0_5 = arith.constant 0 : index
    %c0_6 = arith.constant 0 : index
    %c0_7 = arith.constant 0 : index
    %8 = vector.load %arg4[%c0_5, %c0_6, %c0_7] : memref<1x1x96xf32, #tpu.memory_space<vmem>>, vector<1x1x96xf32>
    %9 = vector.shape_cast %8 : vector<1x1x96xf32> to vector<1x96xf32>
    %10 = vector.broadcast %9 : vector<1x96xf32> to vector<16x96xf32>
    %11 = arith.addf %7, %10 : vector<16x96xf32>
    %12 = vector.extract_strided_slice %11 {offsets = [0, 0], sizes = [16, 32], strides = [1, 1]} : vector<16x96xf32> to vector<16x32xf32>
    %13 = vector.extract_strided_slice %11 {offsets = [0, 32], sizes = [16, 32], strides = [1, 1]} : vector<16x96xf32> to vector<16x32xf32>
    %14 = vector.extract_strided_slice %11 {offsets = [0, 64], sizes = [16, 32], strides = [1, 1]} : vector<16x96xf32> to vector<16x32xf32>
    %15 = vector.extract_strided_slice %12 {offsets = [0, 0], sizes = [16, 8], strides = [1, 1]} : vector<16x32xf32> to vector<16x8xf32>
    %16 = vector.shape_cast %15 : vector<16x8xf32> to vector<2x8x8xf32>
    %17 = vector.extract_strided_slice %12 {offsets = [0, 8], sizes = [16, 8], strides = [1, 1]} : vector<16x32xf32> to vector<16x8xf32>
    %18 = vector.shape_cast %17 : vector<16x8xf32> to vector<2x8x8xf32>
    %19 = vector.extract_strided_slice %12 {offsets = [0, 16], sizes = [16, 8], strides = [1, 1]} : vector<16x32xf32> to vector<16x8xf32>
    %20 = vector.shape_cast %19 : vector<16x8xf32> to vector<2x8x8xf32>
    %21 = vector.extract_strided_slice %12 {offsets = [0, 24], sizes = [16, 8], strides = [1, 1]} : vector<16x32xf32> to vector<16x8xf32>
    %22 = vector.shape_cast %21 : vector<16x8xf32> to vector<2x8x8xf32>
    %23 = tpu.concatenate %16, %18, %20, %22 in 0 : vector<2x8x8xf32>, vector<2x8x8xf32>, vector<2x8x8xf32>, vector<2x8x8xf32> -> vector<8x8x8xf32>
    %24 = vector.extract_strided_slice %13 {offsets = [0, 0], sizes = [16, 8], strides = [1, 1]} : vector<16x32xf32> to vector<16x8xf32>
    %25 = vector.shape_cast %24 : vector<16x8xf32> to vector<2x8x8xf32>
    %26 = vector.extract_strided_slice %13 {offsets = [0, 8], sizes = [16, 8], strides = [1, 1]} : vector<16x32xf32> to vector<16x8xf32>
    %27 = vector.shape_cast %26 : vector<16x8xf32> to vector<2x8x8xf32>
    %28 = vector.extract_strided_slice %13 {offsets = [0, 16], sizes = [16, 8], strides = [1, 1]} : vector<16x32xf32> to vector<16x8xf32>
    %29 = vector.shape_cast %28 : vector<16x8xf32> to vector<2x8x8xf32>
    %30 = vector.extract_strided_slice %13 {offsets = [0, 24], sizes = [16, 8], strides = [1, 1]} : vector<16x32xf32> to vector<16x8xf32>
    %31 = vector.shape_cast %30 : vector<16x8xf32> to vector<2x8x8xf32>
    %32 = tpu.concatenate %25, %27, %29, %31 in 0 : vector<2x8x8xf32>, vector<2x8x8xf32>, vector<2x8x8xf32>, vector<2x8x8xf32> -> vector<8x8x8xf32>
    %33 = vector.extract_strided_slice %14 {offsets = [0, 0], sizes = [16, 8], strides = [1, 1]} : vector<16x32xf32> to vector<16x8xf32>
    %34 = vector.shape_cast %33 : vector<16x8xf32> to vector<2x8x8xf32>
    %35 = vector.extract_strided_slice %14 {offsets = [0, 8], sizes = [16, 8], strides = [1, 1]} : vector<16x32xf32> to vector<16x8xf32>
    %36 = vector.shape_cast %35 : vector<16x8xf32> to vector<2x8x8xf32>
    %37 = vector.extract_strided_slice %14 {offsets = [0, 16], sizes = [16, 8], strides = [1, 1]} : vector<16x32xf32> to vector<16x8xf32>
    %38 = vector.shape_cast %37 : vector<16x8xf32> to vector<2x8x8xf32>
    %39 = vector.extract_strided_slice %14 {offsets = [0, 24], sizes = [16, 8], strides = [1, 1]} : vector<16x32xf32> to vector<16x8xf32>
    %40 = vector.shape_cast %39 : vector<16x8xf32> to vector<2x8x8xf32>
    %41 = tpu.concatenate %34, %36, %38, %40 in 0 : vector<2x8x8xf32>, vector<2x8x8xf32>, vector<2x8x8xf32>, vector<2x8x8xf32> -> vector<8x8x8xf32>
    %42 = arith.truncf %23 : vector<8x8x8xf32> to vector<8x8x8xbf16>
    %43 = arith.truncf %32 : vector<8x8x8xf32> to vector<8x8x8xbf16>
    "tpu.trace_start"() <{level = 10 : i32, message = "bqd,bkd->bqk"}> : () -> ()
    %cst_8 = arith.constant dense<0.000000e+00> : vector<8x8x8xf32>
    %44 = tpu.matmul %42, %43, %cst_8 {dimension_numbers = #tpu.dot_dimension_numbers<[2], [2], [1], [1], [0, 0, 0, 1, 1, 1], [0], [0]>} : vector<8x8x8xbf16>, vector<8x8x8xbf16>, vector<8x8x8xf32> -> vector<8x8x8xf32>
    "tpu.trace_stop"() : () -> ()
    %cst_9 = arith.constant dense<0xFF800000> : vector<8x8xf32>
    %45 = vector.multi_reduction <maximumf>, %44, %cst_9 [2] : vector<8x8x8xf32> to vector<8x8xf32>
    %46 = vector.shape_cast %45 : vector<8x8xf32> to vector<8x8x1xf32>
    %47 = vector.broadcast %46 : vector<8x8x1xf32> to vector<8x8x8xf32>
    %48 = arith.subf %44, %47 : vector<8x8x8xf32>
    %49 = math.exp %48 : vector<8x8x8xf32>
    %cst_10 = arith.constant dense<0.000000e+00> : vector<8x8xf32>
    %50 = vector.multi_reduction <add>, %49, %cst_10 [2] : vector<8x8x8xf32> to vector<8x8xf32>
    %51 = vector.shape_cast %50 : vector<8x8xf32> to vector<8x8x1xf32>
    %52 = tpu.reciprocal %51 {approx = true} : vector<8x8x1xf32> -> vector<8x8x1xf32>
    %53 = vector.broadcast %52 : vector<8x8x1xf32> to vector<8x8x8xf32>
    %54 = arith.mulf %49, %53 : vector<8x8x8xf32>
    %55 = arith.truncf %54 : vector<8x8x8xf32> to vector<8x8x8xbf16>
    %56 = arith.truncf %41 : vector<8x8x8xf32> to vector<8x8x8xbf16>
    "tpu.trace_start"() <{level = 10 : i32, message = "bqk,bkd->bqd"}> : () -> ()
    %cst_11 = arith.constant dense<0.000000e+00> : vector<8x8x8xf32>
    %57 = tpu.matmul %55, %56, %cst_11 {dimension_numbers = #tpu.dot_dimension_numbers<[2], [1], [1], [2], [0, 0, 0, 1, 1, 2], [0], [0]>} : vector<8x8x8xbf16>, vector<8x8x8xbf16>, vector<8x8x8xf32> -> vector<8x8x8xf32>
    "tpu.trace_stop"() : () -> ()
    %58 = vector.extract_strided_slice %57 {offsets = [0, 0, 0], sizes = [2, 8, 8], strides = [1, 1, 1]} : vector<8x8x8xf32> to vector<2x8x8xf32>
    %59 = vector.shape_cast %58 : vector<2x8x8xf32> to vector<16x8xf32>
    %60 = vector.extract_strided_slice %57 {offsets = [2, 0, 0], sizes = [2, 8, 8], strides = [1, 1, 1]} : vector<8x8x8xf32> to vector<2x8x8xf32>
    %61 = vector.shape_cast %60 : vector<2x8x8xf32> to vector<16x8xf32>
    %62 = vector.extract_strided_slice %57 {offsets = [4, 0, 0], sizes = [2, 8, 8], strides = [1, 1, 1]} : vector<8x8x8xf32> to vector<2x8x8xf32>
    %63 = vector.shape_cast %62 : vector<2x8x8xf32> to vector<16x8xf32>
    %64 = vector.extract_strided_slice %57 {offsets = [6, 0, 0], sizes = [2, 8, 8], strides = [1, 1, 1]} : vector<8x8x8xf32> to vector<2x8x8xf32>
    %65 = vector.shape_cast %64 : vector<2x8x8xf32> to vector<16x8xf32>
    %66 = tpu.concatenate %59, %61, %63, %65 in 1 : vector<16x8xf32>, vector<16x8xf32>, vector<16x8xf32>, vector<16x8xf32> -> vector<16x32xf32>
    %67 = arith.truncf %66 : vector<16x32xf32> to vector<16x32xbf16>
    %c0_12 = arith.constant 0 : index
    %c0_13 = arith.constant 0 : index
    %c0_14 = arith.constant 0 : index
    %68 = vector.load %arg5[%c0_12, %c0_13, %c0_14] : memref<1x32x32xbf16, #tpu.memory_space<vmem>>, vector<1x32x32xbf16>
    %69 = vector.shape_cast %68 : vector<1x32x32xbf16> to vector<32x32xbf16>
    %cst_15 = arith.constant dense<0.000000e+00> : vector<16x32xf32>
    %70 = tpu.matmul %67, %69, %cst_15 {dimension_numbers = #tpu.dot_dimension_numbers<[1], [0], [0], [1], [0, 0, 1, 1], [], []>} : vector<16x32xbf16>, vector<32x32xbf16>, vector<16x32xf32> -> vector<16x32xf32>
    %c0_16 = arith.constant 0 : index
    %c0_17 = arith.constant 0 : index
    %c0_18 = arith.constant 0 : index
    %71 = vector.load %arg6[%c0_16, %c0_17, %c0_18] : memref<1x1x32xf32, #tpu.memory_space<vmem>>, vector<1x1x32xf32>
    %72 = vector.shape_cast %71 : vector<1x1x32xf32> to vector<1x32xf32>
    %73 = vector.broadcast %72 : vector<1x32xf32> to vector<16x32xf32>
    %74 = arith.addf %70, %73 : vector<16x32xf32>
    %c0_19 = arith.constant 0 : index
    %c0_20 = arith.constant 0 : index
    %c0_21 = arith.constant 0 : index
    %75 = vector.load %arg7[%c0_19, %c0_20, %c0_21] : memref<1x1x32xf32, #tpu.memory_space<vmem>>, vector<1x1x32xf32>
    %76 = vector.shape_cast %75 : vector<1x1x32xf32> to vector<1x32xf32>
    %c0_22 = arith.constant 0 : index
    %c0_23 = arith.constant 0 : index
    %c0_24 = arith.constant 0 : index
    %77 = vector.load %arg8[%c0_22, %c0_23, %c0_24] : memref<1x1x32xf32, #tpu.memory_space<vmem>>, vector<1x1x32xf32>
    %78 = vector.shape_cast %77 : vector<1x1x32xf32> to vector<1x32xf32>
    %79 = arith.addf %3, %74 : vector<16x32xf32>
    %cst_25 = arith.constant dense<0.000000e+00> : vector<16xf32>
    %80 = vector.multi_reduction <add>, %79, %cst_25 [1] : vector<16x32xf32> to vector<16xf32>
    %81 = vector.shape_cast %80 : vector<16xf32> to vector<16x1xf32>
    %cst_26 = arith.constant 3.200000e+01 : f32
    %82 = vector.broadcast %cst_26 : f32 to vector<16x1xf32>
    %83 = arith.divf %81, %82 : vector<16x1xf32>
    %84 = vector.broadcast %83 : vector<16x1xf32> to vector<16x32xf32>
    %85 = arith.subf %79, %84 : vector<16x32xf32>
    %86 = arith.mulf %85, %85 : vector<16x32xf32>
    %cst_27 = arith.constant dense<0.000000e+00> : vector<16xf32>
    %87 = vector.multi_reduction <add>, %86, %cst_27 [1] : vector<16x32xf32> to vector<16xf32>
    %88 = vector.shape_cast %87 : vector<16xf32> to vector<16x1xf32>
    %cst_28 = arith.constant 3.200000e+01 : f32
    %89 = vector.broadcast %cst_28 : f32 to vector<16x1xf32>
    %90 = arith.divf %88, %89 : vector<16x1xf32>
    %91 = vector.broadcast %83 : vector<16x1xf32> to vector<16x32xf32>
    %92 = arith.subf %79, %91 : vector<16x32xf32>
    %cst_29 = arith.constant 9.99999997E-7 : f32
    %93 = vector.broadcast %cst_29 : f32 to vector<16x1xf32>
    %94 = arith.addf %90, %93 : vector<16x1xf32>
    %95 = math.rsqrt %94 : vector<16x1xf32>
    %96 = vector.broadcast %95 : vector<16x1xf32> to vector<16x32xf32>
    %97 = arith.mulf %92, %96 : vector<16x32xf32>
    %98 = vector.broadcast %76 : vector<1x32xf32> to vector<16x32xf32>
    %99 = arith.mulf %97, %98 : vector<16x32xf32>
    %100 = vector.broadcast %78 : vector<1x32xf32> to vector<16x32xf32>
    %101 = arith.addf %99, %100 : vector<16x32xf32>
    %102 = arith.truncf %101 : vector<16x32xf32> to vector<16x32xbf16>
    %c0_30 = arith.constant 0 : index
    %c0_31 = arith.constant 0 : index
    %c0_32 = arith.constant 0 : index
    %103 = vector.load %arg9[%c0_30, %c0_31, %c0_32] : memref<1x32x64xbf16, #tpu.memory_space<vmem>>, vector<1x32x64xbf16>
    %104 = vector.shape_cast %103 : vector<1x32x64xbf16> to vector<32x64xbf16>
    %cst_33 = arith.constant dense<0.000000e+00> : vector<16x64xf32>
    %105 = tpu.matmul %102, %104, %cst_33 {dimension_numbers = #tpu.dot_dimension_numbers<[1], [0], [0], [1], [0, 0, 1, 1], [], []>} : vector<16x32xbf16>, vector<32x64xbf16>, vector<16x64xf32> -> vector<16x64xf32>
    %c0_34 = arith.constant 0 : index
    %c0_35 = arith.constant 0 : index
    %c0_36 = arith.constant 0 : index
    %106 = vector.load %arg10[%c0_34, %c0_35, %c0_36] : memref<1x1x64xf32, #tpu.memory_space<vmem>>, vector<1x1x64xf32>
    %107 = vector.shape_cast %106 : vector<1x1x64xf32> to vector<1x64xf32>
    %108 = vector.broadcast %107 : vector<1x64xf32> to vector<16x64xf32>
    %109 = arith.addf %105, %108 : vector<16x64xf32>
    %cst_37 = arith.constant 0.000000e+00 : f32
    %110 = vector.broadcast %cst_37 : f32 to vector<16x64xf32>
    %111 = arith.maximumf %109, %110 : vector<16x64xf32>
    %112 = arith.truncf %111 : vector<16x64xf32> to vector<16x64xbf16>
    %c0_38 = arith.constant 0 : index
    %c0_39 = arith.constant 0 : index
    %c0_40 = arith.constant 0 : index
    %113 = vector.load %arg11[%c0_38, %c0_39, %c0_40] : memref<1x64x32xbf16, #tpu.memory_space<vmem>>, vector<1x64x32xbf16>
    %114 = vector.shape_cast %113 : vector<1x64x32xbf16> to vector<64x32xbf16>
    %cst_41 = arith.constant dense<0.000000e+00> : vector<16x32xf32>
    %115 = tpu.matmul %112, %114, %cst_41 {dimension_numbers = #tpu.dot_dimension_numbers<[1], [0], [0], [1], [0, 0, 1, 1], [], []>} : vector<16x64xbf16>, vector<64x32xbf16>, vector<16x32xf32> -> vector<16x32xf32>
    %c0_42 = arith.constant 0 : index
    %c0_43 = arith.constant 0 : index
    %c0_44 = arith.constant 0 : index
    %116 = vector.load %arg12[%c0_42, %c0_43, %c0_44] : memref<1x1x32xf32, #tpu.memory_space<vmem>>, vector<1x1x32xf32>
    %117 = vector.shape_cast %116 : vector<1x1x32xf32> to vector<1x32xf32>
    %118 = vector.broadcast %117 : vector<1x32xf32> to vector<16x32xf32>
    %119 = arith.addf %115, %118 : vector<16x32xf32>
    %120 = arith.addf %101, %119 : vector<16x32xf32>
    %cst_45 = arith.constant dense<0.000000e+00> : vector<16xf32>
    %121 = vector.multi_reduction <add>, %120, %cst_45 [1] : vector<16x32xf32> to vector<16xf32>
    %122 = vector.shape_cast %121 : vector<16xf32> to vector<16x1xf32>
    %cst_46 = arith.constant 3.200000e+01 : f32
    %123 = vector.broadcast %cst_46 : f32 to vector<16x1xf32>
    %124 = arith.divf %122, %123 : vector<16x1xf32>
    %125 = vector.broadcast %124 : vector<16x1xf32> to vector<16x32xf32>
    %126 = arith.subf %120, %125 : vector<16x32xf32>
    %127 = arith.mulf %126, %126 : vector<16x32xf32>
    %cst_47 = arith.constant dense<0.000000e+00> : vector<16xf32>
    %128 = vector.multi_reduction <add>, %127, %cst_47 [1] : vector<16x32xf32> to vector<16xf32>
    %129 = vector.shape_cast %128 : vector<16xf32> to vector<16x1xf32>
    %cst_48 = arith.constant 3.200000e+01 : f32
    %130 = vector.broadcast %cst_48 : f32 to vector<16x1xf32>
    %131 = arith.divf %129, %130 : vector<16x1xf32>
    %132 = vector.broadcast %124 : vector<16x1xf32> to vector<16x32xf32>
    %133 = arith.subf %120, %132 : vector<16x32xf32>
    %cst_49 = arith.constant 9.99999997E-7 : f32
    %134 = vector.broadcast %cst_49 : f32 to vector<16x1xf32>
    %135 = arith.addf %131, %134 : vector<16x1xf32>
    %136 = math.rsqrt %135 : vector<16x1xf32>
    %137 = vector.broadcast %136 : vector<16x1xf32> to vector<16x32xf32>
    %138 = arith.mulf %133, %137 : vector<16x32xf32>
    %139 = vector.broadcast %76 : vector<1x32xf32> to vector<16x32xf32>
    %140 = arith.mulf %138, %139 : vector<16x32xf32>
    %141 = vector.broadcast %78 : vector<1x32xf32> to vector<16x32xf32>
    %142 = arith.addf %140, %141 : vector<16x32xf32>
    %c0_50 = arith.constant 0 : index
    %c0_51 = arith.constant 0 : index
    %143 = vector.load %arg14[%c0_50, %c0_51] : memref<16x32xf32, #tpu.memory_space<vmem>>, vector<16x32xf32>
    tpu.vector_store %arg14[%c0_50, %c0_51], %142 {strides = array<i32>} : memref<16x32xf32, #tpu.memory_space<vmem>>, vector<16x32xf32>,
    %c1_i32 = arith.constant 1 : i32
    %144 = arith.cmpi eq, %arg1, %c1_i32 : i32
    %145 = arith.extui %144 : i1 to i32
    %c0_i32_52 = arith.constant 0 : i32
    %146 = arith.cmpi ne, %145, %c0_i32_52 : i32
    scf.if %146 {
      %c0_53 = arith.constant 0 : index
      %c0_54 = arith.constant 0 : index
      %147 = vector.load %arg13[%c0_53, %c0_54] : memref<16x32xf32, #tpu.memory_space<vmem>>, vector<16x32xf32>
      tpu.vector_store %arg13[%c0_53, %c0_54], %142 {strides = array<i32>} : memref<16x32xf32, #tpu.memory_space<vmem>>, vector<16x32xf32>,
    } else {
    }
    return
  }
  func.func @transform_0(%arg0: i32, %arg1: i32) -> (i32, i32) {
    %c0_i32 = arith.constant 0 : i32
    %c0_i32_0 = arith.constant 0 : i32
    return %arg0, %c0_i32 : i32, i32
  }
  func.func @transform_1(%arg0: i32, %arg1: i32) -> (i32, i32, i32) {
    %c0_i32 = arith.constant 0 : i32
    %c0_i32_0 = arith.constant 0 : i32
    %c0_i32_1 = arith.constant 0 : i32
    return %arg1, %c0_i32, %c0_i32_0 : i32, i32, i32
  }
  func.func @transform_2(%arg0: i32, %arg1: i32) -> (i32, i32, i32) {
    %c0_i32 = arith.constant 0 : i32
    %c0_i32_0 = arith.constant 0 : i32
    %c0_i32_1 = arith.constant 0 : i32
    return %arg1, %c0_i32, %c0_i32_0 : i32, i32, i32
  }
  func.func @transform_3(%arg0: i32, %arg1: i32) -> (i32, i32, i32) {
    %c0_i32 = arith.constant 0 : i32
    %c0_i32_0 = arith.constant 0 : i32
    %c0_i32_1 = arith.constant 0 : i32
    return %arg1, %c0_i32, %c0_i32_0 : i32, i32, i32
  }
  func.func @transform_4(%arg0: i32, %arg1: i32) -> (i32, i32, i32) {
    %c0_i32 = arith.constant 0 : i32
    %c0_i32_0 = arith.constant 0 : i32
    %c0_i32_1 = arith.constant 0 : i32
    return %arg1, %c0_i32, %c0_i32_0 : i32, i32, i32
  }
  func.func @transform_5(%arg0: i32, %arg1: i32) -> (i32, i32, i32) {
    %c0_i32 = arith.constant 0 : i32
    %c0_i32_0 = arith.constant 0 : i32
    %c0_i32_1 = arith.constant 0 : i32
    return %arg1, %c0_i32, %c0_i32_0 : i32, i32, i32
  }
  func.func @transform_6(%arg0: i32, %arg1: i32) -> (i32, i32, i32) {
    %c0_i32 = arith.constant 0 : i32
    %c0_i32_0 = arith.constant 0 : i32
    %c0_i32_1 = arith.constant 0 : i32
    return %arg1, %c0_i32, %c0_i32_0 : i32, i32, i32
  }
  func.func @transform_7(%arg0: i32, %arg1: i32) -> (i32, i32, i32) {
    %c0_i32 = arith.constant 0 : i32
    %c0_i32_0 = arith.constant 0 : i32
    %c0_i32_1 = arith.constant 0 : i32
    return %arg1, %c0_i32, %c0_i32_0 : i32, i32, i32
  }
  func.func @transform_8(%arg0: i32, %arg1: i32) -> (i32, i32, i32) {
    %c0_i32 = arith.constant 0 : i32
    %c0_i32_0 = arith.constant 0 : i32
    %c0_i32_1 = arith.constant 0 : i32
    return %arg1, %c0_i32, %c0_i32_0 : i32, i32, i32
  }
  func.func @transform_9(%arg0: i32, %arg1: i32) -> (i32, i32, i32) {
    %c0_i32 = arith.constant 0 : i32
    %c0_i32_0 = arith.constant 0 : i32
    %c0_i32_1 = arith.constant 0 : i32
    return %arg1, %c0_i32, %c0_i32_0 : i32, i32, i32
  }
  func.func @transform_10(%arg0: i32, %arg1: i32) -> (i32, i32, i32) {
    %c0_i32 = arith.constant 0 : i32
    %c0_i32_0 = arith.constant 0 : i32
    %c0_i32_1 = arith.constant 0 : i32
    return %arg1, %c0_i32, %c0_i32_0 : i32, i32, i32
  }
  func.func @transform_11(%arg0: i32, %arg1: i32) -> (i32, i32) {
    %c0_i32 = arith.constant 0 : i32
    %c0_i32_0 = arith.constant 0 : i32
    return %arg0, %c0_i32 : i32, i32
  }
}

</mosaic_0001>

<bundles_post_ra>
// kernel: tpu_custom_call.1
= control target key start
LH: loop header
LB: loop body
LE: loop exit
PB: predicated region body
PF: predicated region fallthrough
CT: control target
= control target key end

     0   :  { %s4083_s0 = inlined_call_operand.hbm [shape: f32[16,32], index: 0, kind: input, shape index: {}]   ;;  %s4084_s1 = inlined_call_operand.hbm [shape: bf16[2,32,96], index: 1, kind: input, shape index: {}]   ;;  %s4085_s2 = inlined_call_operand.hbm [shape: f32[2,1,96], index: 2, kind: input, shape index: {}]   ;;  %s4086_s3 = inlined_call_operand.hbm [shape: bf16[2,32,32], index: 3, kind: input, shape index: {}]   ;;  %s4087_s4 = inlined_call_operand.hbm [shape: f32[2,1,32], index: 4, kind: input, shape index: {}]   ;;  %s4088_s5 = inlined_call_operand.hbm [shape: f32[2,1,32], index: 5, kind: input, shape index: {}]   ;;  %s4089_s6 = inlined_call_operand.hbm [shape: f32[2,1,32], index: 6, kind: input, shape index: {}]   ;;  %s4090_s7 = inlined_call_operand.hbm [shape: bf16[2,32,64], index: 7, kind: input, shape index: {}]   ;;  %s4091_s8 = inlined_call_operand.hbm [shape: f32[2,1,64], index: 8, kind: input, shape index: {}]   ;;  %s4092_s9 = inlined_call_operand.hbm [shape: bf16[2,64,32], index: 9, kind: input, shape index: {}]   ;;  %s4093_s10 = inlined_call_operand.hbm [shape: f32[2,1,32], index: 10, kind: input, shape index: {}]   ;;  %s4094_s11 = inlined_call_operand.hbm [shape: f32[16,32], index: 11, kind: output, shape index: {}]  }
   0x1   :  { %4114 = sst [smem:[#allocation33_spill]] %s4083_s0 }
   0x2   :  { %4115 = sst [smem:[#allocation34_spill]] %s4084_s1 }
   0x3   :  { %4116 = sst [smem:[#allocation35_spill]] %s4085_s2 }
   0x4   :  { %4117 = sst [smem:[#allocation36_spill]] %s4086_s3 }
   0x5   :  { %4118 = sst [smem:[#allocation37_spill]] %s4088_s5 }
   0x6   :  { %4119 = sst [smem:[#allocation38_spill]] %s4090_s7 }
   0x7   :  { %4120 = sst [smem:[#allocation39_spill]] %s4091_s8 }
   0x8   :  { %4121 = sst [smem:[#allocation40_spill]] %s4093_s10 }
   0x9   :  { %4122 = sst [smem:[#allocation41_spill]] %s4094_s11 }
   0xa   :  { %16 = vsyncpa [#allocation4], 0 }
   0xb   :  { %17 = vsyncpa [#allocation7], 0 }
   0xc   :  { %19 = vsyncpa [#allocation7 + $0x1], 0 }
   0xd   :  { %20 = vsyncpa [#allocation10], 0 }
   0xe   :  { %22 = vsyncpa [#allocation10 + $0x1], 0 }
   0xf   :  { %23 = vsyncpa [#allocation13], 0 }
  0x10   :  { %25 = vsyncpa [#allocation13 + $0x1], 0 }
  0x11   :  { %26 = vsyncpa [#allocation16], 0 }
  0x12   :  { %28 = vsyncpa [#allocation16 + $0x1], 0 }
  0x13   :  { %29 = vsyncpa [#allocation19], 0 }
  0x14   :  { %31 = vsyncpa [#allocation19 + $0x1], 0 }
  0x15   :  { %32 = vsyncpa [#allocation5], 0  ;;  %s3312_s17 = smov 0   ;;  %s3314_s18 = smov 0  }
  0x16   :  { %s3316_s19 = smov 0   ;;  %s3318_s20 = smov 0  }
  0x17   :  { %s3320_s21 = smov 0   ;;  %s3322_s22 = smov 0  }
  0x18 LB: > { %4123 = sst [smem:[#allocation29_spill]] %s3211_s19  ;;  %s47_s23 = sadd.s32 1, %s3219_s21  ;;  %s3223_s22 = sphi %s3322_s22, %s38_s22   ;;  %s3219_s21 = sphi %s3320_s21, %s4167_s21   ;;  %s3215_s20 = sphi %s3318_s20, %s4166_s20   ;;  %s3211_s19 = sphi %s3316_s19, %s4162_s19   ;;  %s3207_s18 = sphi %s3314_s18, %s4165_s18   ;;  %s3203_s17 = sphi %s3312_s17, %s4164_s17  }
  0x19   : > { %4124 = sst [smem:[#allocation30_spill]] %s3215_s20  ;;  %s83_s24 = sadd.s32 1, %s3211_s19 }
  0x1a   : > { %p48_p0 = scmp.ge.s32.totalorder %s47_s23, 2  ;;  %p90_p1 = scmp.ne.s32.totalorder %s3211_s19, %s3207_s18 }
  0x1b   : > { %p91_p2 = scmp.eq.s32.totalorder %s3223_s22, 0  ;;  %p2646_p4 = scmp.lt.s32.totalorder %s3223_s22, 2 }
  0x1c   : > { %s4169_s23 = smov (%p48_p0, %s47_s23), 0  ;;  %s3353_s26 = sand.u32 1, %s3223_s22  }
  0x1d   : > { %4125 = sst [smem:[#allocation31_spill]] %s4169_s23  ;;  %p92_p3 = por %p91_p2, %p90_p1 }
  0x1e   : > { %s80_s25 = ssub.s32 %s3219_s21, %s4169_s23  ;;  %s3356_s27 = sand.u32 1, %s3211_s19  }
  0x1f   : > { %p81_p5 = scmp.eq.s32.totalorder %s80_s25, 0  ;;  %s3359_s28 = sshll.u32 %s3219_s21, 8 }
  0x20   : > { %s3365_s30 = sshll.u32 %s3356_s27, 4  ;;  %s4127_s1 = sld [smem:[#allocation34_spill]] }
  0x21   : > { %s3362_s29 = scalar_select %p81_p5, %s3211_s19, %s83_s24  }
  0x22   : > { %p3373_p6 = pnand %p2646_p4, %p92_p3  ;;  %s400_s16 = scalar_lea.vmem [#allocation6], %s3365_s30 }
  0x23   : > { %4126 = sst [smem:[#allocation32_spill]] %s3362_s29  ;;  %s407_s24 = sshll.u32 %s400_s16, 4  ;;  %s3378_s24 = int_to_ptr.vmem [resolvable:$true] %s407_s24 }
  0x24   : > { %s4128_s15 = scalar_select %p3373_p6, 1, 0 }
  0x25   : > { %p3385_p8 = pneg %p3373_p6 }
  0x26   : > { %s3371_s14 = scalar_lea.hbm %s4127_s1, %s3359_s28  ;;  %s2800_s19 = scalar_lea.hbm %s4127_s1, 512 }
  0x27   : > { %s2795_s23 = scalar_lea.hbm %s3371_s14, 256  ;;  %p2801_p11 = scmp.lt.u32.totalorder %s3371_s14, %s4127_s1 }
  0x28   : > { %p2796_p7 = scmp.ne.s32.totalorder %s3371_s14, %s2795_s23  ;;  %p2802_p12 = scmp.lt.u32.totalorder %s2800_s19, %s2795_s23 }
  0x29   : > { %s4129_s12 = scalar_select %p3385_p8, 1, 0 }
  0x2a   : > { %p2798_p9 = pnand %p3385_p8, %p2796_p7  ;;  %p2803_p13 = por %p2802_p12, %p2801_p11 }
  0x2b   : > { %p2804_p0 = scmp.lt.u32.totalorder %s2795_s23, %s3371_s14 }
  0x2c   : > { %p2799_p10 = pneg %p2798_p9 }
  0x2d   : > { %p2805_p1 = por %p2804_p0, %p2803_p13 }
  0x2f   : > { %p2806_p2 = pnand %p2805_p1, %p2799_p10 }
  0x31   : > { %2809 = shalt.err (!%p2806_p2)
}
  0x32   : > { %s2810_s25 = scalar_lea.vmem %s3378_s24, 256  ;;  %s3225_s29 = smov [#allocation6]  }
  0x33   : > { %p2811_p3 = scmp.ne.s32.totalorder %s3378_s24, %s2810_s25  ;;  %s2815_s13 = sshll.u32 %s3225_s29, 4  ;;  %s2816_s13 = int_to_ptr.vmem [resolvable:$false] %s2815_s13 }
  0x34   : > { %s2817_s11 = scalar_lea.vmem %s2816_s13, 512  ;;  %p2818_p7 = scmp.lt.s32.totalorder %s3378_s24, %s2816_s13 }
  0x35   : > { %p2813_p4 = pnand %p2811_p3, %p3385_p8  ;;  %p2819_p9 = scmp.lt.s32.totalorder %s2817_s11, %s2810_s25 }
  0x37   : > { %p2814_p5 = pneg %p2813_p4  ;;  %p2820_p11 = por %p2819_p9, %p2818_p7 }
  0x39   : > { %p2821_p12 = pnand %p2820_p11, %p2814_p5 }
  0x3b   : > { %2824 = shalt.err (!%p2821_p12)
}
  0x3c   : > { %s4101_s19 = smov 64   ;;  %s3227_s23 = smov 4  }
  0x3d   : > { %s4130_s16 = scalar_lea.sflag [#allocation7], %s3353_s26  ;;  %s4131_s3 = sld [smem:[#allocation36_spill]] }
  0x3e   : > { %2617 = dma.hbm_to_vmem [thread:$0]  (!%p3373_p6), %s3371_s14, 256, %s3378_s24, %s4130_s16, %s4101_s19, %s4101_s19, %s3227_s23  }
  0x3f   : > { %s438_s11 = scalar_lea.vmem [#allocation9], %s3365_s30  ;;  %s3421_s20 = sshll.u32 %s3219_s21, 4 }
  0x40   : > { %s445_s1 = sshll.u32 %s438_s11, 4  ;;  %s4100_s10 = scalar_lea.sflag [#allocation10], %s3353_s26  ;;  %s3423_s1 = int_to_ptr.vmem [resolvable:$true] %s445_s1 }
  0x43   : > { %s3417_s13 = scalar_lea.hbm %s4131_s3, %s3359_s28  ;;  %s2830_s16 = scalar_lea.hbm %s4131_s3, 512 }
  0x44   : > { %s2825_s8 = scalar_lea.hbm %s3417_s13, 256  ;;  %p2831_p1 = scmp.lt.u32.totalorder %s3417_s13, %s4131_s3 }
  0x45   : > { %p2826_p10 = scmp.ne.s32.totalorder %s3417_s13, %s2825_s8  ;;  %p2832_p2 = scmp.lt.u32.totalorder %s2830_s16, %s2825_s8 }
  0x46   : > { %p2834_p4 = scmp.lt.u32.totalorder %s2825_s8, %s3417_s13 }
  0x47   : > { %p2828_p13 = pnand %p2826_p10, %p3385_p8  ;;  %p2833_p3 = por %p2832_p2, %p2831_p1 }
  0x49   : > { %p2829_p0 = pneg %p2828_p13  ;;  %p2835_p5 = por %p2834_p4, %p2833_p3 }
  0x4b   : > { %p2836_p7 = pnand %p2835_p5, %p2829_p0 }
  0x4d   : > { %2839 = shalt.err (!%p2836_p7)
}
  0x4e   : > { %s2840_s11 = scalar_lea.vmem %s3423_s1, 256  ;;  %s3228_s14 = smov [#allocation9]  }
  0x4f   : > { %p2841_p9 = scmp.ne.s32.totalorder %s3423_s1, %s2840_s11  ;;  %s2845_s24 = sshll.u32 %s3228_s14, 4  ;;  %s2846_s24 = int_to_ptr.vmem [resolvable:$false] %s2845_s24 }
  0x50   : > { %s2847_s25 = scalar_lea.vmem %s2846_s24, 512  ;;  %p2848_p10 = scmp.lt.s32.totalorder %s3423_s1, %s2846_s24 }
  0x51   : > { %p2843_p11 = pnand %p2841_p9, %p3385_p8  ;;  %p2849_p13 = scmp.lt.s32.totalorder %s2847_s25, %s2840_s11 }
  0x53   : > { %p2844_p12 = pneg %p2843_p11  ;;  %p2850_p1 = por %p2849_p13, %p2848_p10 }
  0x55   : > { %p2851_p2 = pnand %p2850_p1, %p2844_p12 }
  0x57   : > { %2854 = shalt.err (!%p2851_p2)
}
  0x58   : > { %2623 = dma.hbm_to_vmem [thread:$0]  (!%p3373_p6), %s3417_s13, 256, %s3423_s1, %s4100_s10, %s4101_s19, %s4101_s19, %s3227_s23  }
  0x59   : > { %s4132_s5 = sld [smem:[#allocation37_spill]]  ;;  %s475_s11 = scalar_lea.vmem [#allocation12], %s3356_s27 }
  0x5a   : > { %s482_s14 = sshll.u32 %s475_s11, 4  ;;  %s4107_s24 = scalar_lea.sflag [#allocation13], %s3353_s26  ;;  %s483_s14 = int_to_ptr.vmem [resolvable:$true] %s482_s14 }
  0x5f   : > { %s3456_s29 = scalar_lea.hbm %s4132_s5, %s3421_s20  ;;  %s2860_s13 = scalar_lea.hbm %s4132_s5, 32 }
  0x60   : > { %s2855_s25 = scalar_lea.hbm %s3456_s29, 16  ;;  %p2861_p5 = scmp.lt.u32.totalorder %s3456_s29, %s4132_s5 }
  0x61   : > { %p2856_p0 = scmp.ne.s32.totalorder %s3456_s29, %s2855_s25  ;;  %p2862_p7 = scmp.lt.u32.totalorder %s2860_s13, %s2855_s25 }
  0x62   : > { %p2864_p11 = scmp.lt.u32.totalorder %s2855_s25, %s3456_s29 }
  0x63   : > { %p2858_p3 = pnand %p2856_p0, %p3385_p8  ;;  %p2863_p9 = por %p2862_p7, %p2861_p5 }
  0x65   : > { %p2859_p4 = pneg %p2858_p3  ;;  %p2865_p12 = por %p2864_p11, %p2863_p9 }
  0x67   : > { %p2866_p10 = pnand %p2865_p12, %p2859_p4 }
  0x69   : > { %2869 = shalt.err (!%p2866_p10)
}
  0x6a   : > { %s2870_s11 = scalar_lea.vmem %s483_s14, 16  ;;  %s3229_s10 = smov [#allocation12]  }
  0x6b   : > { %p2871_p13 = scmp.ne.s32.totalorder %s483_s14, %s2870_s11  ;;  %s2875_s19 = sshll.u32 %s3229_s10, 4  ;;  %s2876_s19 = int_to_ptr.vmem [resolvable:$false] %s2875_s19 }
  0x6c   : > { %s2877_s3 = scalar_lea.vmem %s2876_s19, 32  ;;  %p2878_p0 = scmp.lt.s32.totalorder %s483_s14, %s2876_s19 }
  0x6d   : > { %p2873_p1 = pnand %p2871_p13, %p3385_p8  ;;  %p2879_p3 = scmp.lt.s32.totalorder %s2877_s3, %s2870_s11 }
  0x6f   : > { %p2874_p2 = pneg %p2873_p1  ;;  %p2880_p6 = por %p2879_p3, %p2878_p0 }
  0x71   : > { %p2881_p5 = pnand %p2880_p6, %p2874_p2 }
  0x73   : > { %2884 = shalt.err (!%p2881_p5)
}
  0x74   : > { %p4133_p7 = scmp.ne.s32.totalorder %s4128_s15, 0  ;;  %s4134_s7 = sld [smem:[#allocation38_spill]] }
  0x75   : > { %s510_s19 = scalar_lea.vmem [#allocation15], %s3365_s30  ;;  %s4106_s8 = scalar_lea.sflag [#allocation16], %s3353_s26 }
  0x76   : > { %2629 = dma.hbm_to_vmem [thread:$0]  (!%p4133_p7), %s3456_s29, 16, %s483_s14, %s4107_s24  }
  0x77   : > { %s517_s13 = sshll.u32 %s510_s19, 4  ;;  %s3486_s13 = int_to_ptr.vmem [resolvable:$true] %s517_s13 }
  0x7a   : > { %s3483_s10 = scalar_lea.hbm %s4134_s7, %s3359_s28  ;;  %s2890_s11 = scalar_lea.hbm %s4134_s7, 512 }
  0x7b   : > { %s2885_s16 = scalar_lea.hbm %s3483_s10, 256  ;;  %p2891_p11 = scmp.lt.u32.totalorder %s3483_s10, %s4134_s7 }
  0x7c   : > { %p2886_p6 = scmp.ne.s32.totalorder %s3483_s10, %s2885_s16  ;;  %p2892_p12 = scmp.lt.u32.totalorder %s2890_s11, %s2885_s16 }
  0x7d   : > { %p2894_p13 = scmp.lt.u32.totalorder %s2885_s16, %s3483_s10 }
  0x7e   : > { %p2888_p4 = pnand %p2886_p6, %p3385_p8  ;;  %p2893_p10 = por %p2892_p12, %p2891_p11 }
  0x80   : > { %p2889_p9 = pneg %p2888_p4  ;;  %p2895_p1 = por %p2894_p13, %p2893_p10 }
  0x82   : > { %p2896_p2 = pnand %p2895_p1, %p2889_p9 }
  0x84   : > { %2899 = shalt.err (!%p2896_p2)
}
  0x85   : > { %s2900_s30 = scalar_lea.vmem %s3486_s13, 256  ;;  %s3230_s25 = smov [#allocation15]  }
  0x86   : > { %p2901_p0 = scmp.ne.s32.totalorder %s3486_s13, %s2900_s30  ;;  %s2905_s1 = sshll.u32 %s3230_s25, 4  ;;  %s2906_s1 = int_to_ptr.vmem [resolvable:$false] %s2905_s1 }
  0x87   : > { %s2907_s19 = scalar_lea.vmem %s2906_s1, 512  ;;  %p2908_p6 = scmp.lt.s32.totalorder %s3486_s13, %s2906_s1 }
  0x88   : > { %p2903_p3 = pnand %p2901_p0, %p3385_p8  ;;  %p2909_p4 = scmp.lt.s32.totalorder %s2907_s19, %s2900_s30 }
  0x8a   : > { %p2904_p5 = pneg %p2903_p3  ;;  %p2910_p11 = por %p2909_p4, %p2908_p6 }
  0x8c   : > { %p2911_p12 = pnand %p2910_p11, %p2904_p5 }
  0x8e   : > { %2914 = shalt.err (!%p2911_p12)
}
  0x8f   : > { %s4135_s16 = smov 64   ;;  %s2348_s29 = sshll.u32 %s3356_s27, 5 }
  0x90   : > { %2635 = dma.hbm_to_vmem [thread:$0]  (!%p4133_p7), %s3483_s10, 256, %s3486_s13, %s4106_s8, %s4135_s16, %s4135_s16, %s3227_s23  }
  0x91   : > { %s2403_s14 = sshll.u32 %s3219_s21, 9  ;;  %s548_s30 = scalar_lea.vmem [#allocation18], %s2348_s29 }
  0x92   : > { %s3520_s3 = scalar_lea.hbm %s4092_s9, %s2403_s14  ;;  %s555_s25 = sshll.u32 %s548_s30, 4  ;;  %s3522_s25 = int_to_ptr.vmem [resolvable:$true] %s555_s25 }
  0x93   : > { %s4105_s1 = scalar_lea.sflag [#allocation19], %s3353_s26  ;;  %s2915_s19 = scalar_lea.hbm %s3520_s3, 512 }
  0x94   : > { %p2916_p9 = scmp.ne.s32.totalorder %s3520_s3, %s2915_s19  ;;  %s2920_s11 = scalar_lea.hbm %s4092_s9, 1024 }
  0x95   : > { %p2921_p1 = scmp.lt.u32.totalorder %s3520_s3, %s4092_s9  ;;  %p2922_p2 = scmp.lt.u32.totalorder %s2920_s11, %s2915_s19 }
  0x96   : > { %p2918_p10 = pnand %p2916_p9, %p3385_p8  ;;  %p2924_p3 = scmp.lt.u32.totalorder %s2915_s19, %s3520_s3 }
  0x97   : > { %p2923_p0 = por %p2922_p2, %p2921_p1 }
  0x98   : > { %p2919_p13 = pneg %p2918_p10 }
  0x99   : > { %p2925_p5 = por %p2924_p3, %p2923_p0 }
  0x9b   : > { %p2926_p6 = pnand %p2925_p5, %p2919_p13 }
  0x9d   : > { %2929 = shalt.err (!%p2926_p6)
}
  0x9e   : > { %s2930_s29 = scalar_lea.vmem %s3522_s25, 512  ;;  %s3231_s30 = smov [#allocation18]  }
  0x9f   : > { %p2931_p4 = scmp.ne.s32.totalorder %s3522_s25, %s2930_s29  ;;  %s2935_s10 = sshll.u32 %s3231_s30, 4  ;;  %s2936_s10 = int_to_ptr.vmem [resolvable:$false] %s2935_s10 }
  0xa0   : > { %s2937_s13 = scalar_lea.vmem %s2936_s10, 1024  ;;  %p2938_p9 = scmp.lt.s32.totalorder %s3522_s25, %s2936_s10 }
  0xa1   : > { %p2933_p11 = pnand %p2931_p4, %p3385_p8  ;;  %p2939_p10 = scmp.lt.s32.totalorder %s2937_s13, %s2930_s29 }
  0xa3   : > { %p2934_p12 = pneg %p2933_p11  ;;  %p2940_p1 = por %p2939_p10, %p2938_p9 }
  0xa5   : > { %p2941_p2 = pnand %p2940_p1, %p2934_p12 }
  0xa7   : > { %2944 = shalt.err (!%p2941_p2)
}
  0xa8   : > { %2641 = dma.hbm_to_vmem [thread:$0]  (!%p4133_p7), %s3520_s3, 512, %s3522_s25, %s4105_s1, %s4135_s16, %s4135_s16, %s3227_s23  }
  0xa9   : > { %s3552_s19 = sadd.s32 4294967295, %s3223_s22   ;;  %p96_p13 = scmp.ne.s32.totalorder %s3207_s18, %s3203_s17 }
  0xaa   : > { %p4108_p0 = scmp.eq.s32.totalorder %s3552_s19, 0  ;;  %p2331_p3 = scmp.ge.s32.totalorder %s3223_s22, 1 }
  0xab   : > { %p367_p5 = scmp.lt.s32.totalorder %s3223_s22, 3  ;;  %s3232_s23 = smov [#allocation3]  }
  0xac   : > { %p3561_p6 = por %p4108_p0, %p96_p13  ;;  %s382_s16 = sshll.u32 %s3232_s23, 4  ;;  %s3569_s16 = int_to_ptr.vmem [resolvable:$true] %s382_s16 }
  0xad   : > { %p3565_p4 = pnand %p2331_p3, %p367_p5  ;;  %s4138_s2 = sld [smem:[#allocation35_spill]] }
  0xae   : > { %s4136_s11 = scalar_select %p3561_p6, 1, 0 }
  0xaf   : > { %s4137_s14 = scalar_select %p3565_p4, 1, 0 }
  0xb0   : > { %p2610_p11 = pneg %p3565_p4  ;;  %s420_s29 = scalar_lea.vmem [#allocation8], %s3356_s27 }
  0xb1   : > { %s427_s30 = sshll.u32 %s420_s29, 4  ;;  %s3592_s23 = scalar_lea.hbm %s4087_s4, %s3421_s20  ;;  %s3586_s30 = int_to_ptr.vmem [resolvable:$true] %s427_s30 }
  0xb2   : > { %p3581_p12 = pnand %p2610_p11, %p4108_p0  ;;  %s4140_s0 = sld [smem:[#allocation33_spill]] }
  0xb3   : > { %s3577_s25 = scalar_lea.hbm %s4138_s2, %s3421_s20 }
  0xb4   : > { %p2947_p10 = pneg %p3581_p12 }
  0xb8   : > { %s2945_s17 = scalar_lea.hbm %s4140_s0, 256 }
  0xb9   : > { %p2946_p9 = scmp.ne.s32.totalorder %s4140_s0, %s2945_s17  ;;  %p2952_p13 = scmp.lt.u32.totalorder %s2945_s17, %s4140_s0 }
  0xbb   : > { %p2948_p1 = pnand %p2947_p10, %p2946_p9 }
  0xbd   : > { %p2949_p2 = pneg %p2948_p1 }
  0xbf   : > { %p2954_p3 = pnand %p2952_p13, %p2949_p2 }
  0xc1   : > { %2957 = shalt.err (!%p2954_p3)
}
  0xc2   : > { %s2958_s10 = scalar_lea.vmem %s3569_s16, 256  ;;  %p2966_p6 = scmp.lt.s32.totalorder %s3569_s16, %s3569_s16 }
  0xc3   : > { %p2959_p5 = scmp.ne.s32.totalorder %s3569_s16, %s2958_s10  ;;  %p2967_p4 = scmp.lt.s32.totalorder %s2958_s10, %s2958_s10 }
  0xc5   : > { %p2961_p11 = pnand %p2959_p5, %p2947_p10  ;;  %p2968_p7 = por %p2967_p4, %p2966_p6 }
  0xc7   : > { %p2962_p0 = pneg %p2961_p11 }
  0xc9   : > { %p2969_p8 = pnand %p2968_p7, %p2962_p0 }
  0xcb   : > { %2972 = shalt.err (!%p2969_p8)
}
  0xcc   : > { %s3233_s24 = smov 128   ;;  %s3234_s5 = smov 8  }
  0xcd   : > { %2613 = dma.hbm_to_vmem [thread:$0]  (!%p3581_p12), %s4140_s0, 256, %s3569_s16, [#allocation4], %s3233_s24, %s3233_s24, %s3234_s5  }
  0xce   : > { %s2973_s13 = scalar_lea.hbm %s3577_s25, 16  ;;  %p4141_p10 = scmp.ne.s32.totalorder %s4129_s12, 0 }
  0xcf   : > { %p2974_p9 = scmp.ne.s32.totalorder %s3577_s25, %s2973_s13  ;;  %s2978_s29 = scalar_lea.hbm %s4138_s2, 32 }
  0xd0   : > { %p2979_p8 = scmp.lt.u32.totalorder %s3577_s25, %s4138_s2  ;;  %p2980_p0 = scmp.lt.u32.totalorder %s2978_s29, %s2973_s13 }
  0xd1   : > { %p2976_p6 = pnand %p2974_p9, %p4141_p10  ;;  %p2982_p1 = scmp.lt.u32.totalorder %s2973_s13, %s3577_s25 }
  0xd2   : > { %p2981_p4 = por %p2980_p0, %p2979_p8 }
  0xd3   : > { %p2977_p7 = pneg %p2976_p6 }
  0xd4   : > { %p2983_p2 = por %p2982_p1, %p2981_p4 }
  0xd6   : > { %p2984_p13 = pnand %p2983_p2, %p2977_p7 }
  0xd8   : > { %2987 = shalt.err (!%p2984_p13)
}
  0xd9   : > { %s2988_s16 = scalar_lea.vmem %s3586_s30, 16  ;;  %s3235_s28 = smov [#allocation8]  }
  0xda   : > { %p2989_p12 = scmp.ne.s32.totalorder %s3586_s30, %s2988_s16  ;;  %s2993_s24 = sshll.u32 %s3235_s28, 4  ;;  %s2994_s24 = int_to_ptr.vmem [resolvable:$false] %s2993_s24 }
  0xdb   : > { %s2995_s7 = scalar_lea.vmem %s2994_s24, 32  ;;  %p2996_p11 = scmp.lt.s32.totalorder %s3586_s30, %s2994_s24 }
  0xdc   : > { %p2991_p3 = pnand %p2989_p12, %p4141_p10  ;;  %p2997_p9 = scmp.lt.s32.totalorder %s2995_s7, %s2988_s16 }
  0xde   : > { %p2992_p5 = pneg %p2991_p3  ;;  %p2998_p6 = por %p2997_p9, %p2996_p11 }
  0xe0   : > { %p2999_p8 = pnand %p2998_p6, %p2992_p5 }
  0xe2   : > { %3002 = shalt.err (!%p2999_p8)
}
  0xe3   : > { %p4142_p7 = scmp.ne.s32.totalorder %s4128_s15, 0  ;;  %s4143_s5 = scalar_lea.sflag [#allocation7], %s3353_s26 }
  0xe4   : > { %s458_s8 = scalar_lea.vmem [#allocation11], %s3356_s27  ;;  %s3643_s3 = scalar_lea.hbm %s4089_s6, %s3421_s20 }
  0xe5   : > { %2620 = dma.hbm_to_vmem [thread:$0]  (!%p4142_p7), %s3577_s25, 16, %s3586_s30, %s4143_s5  }
  0xe6   : > { %s465_s1 = sshll.u32 %s458_s8, 4  ;;  %s3003_s29 = scalar_lea.hbm %s3592_s23, 16  ;;  %s466_s1 = int_to_ptr.vmem [resolvable:$true] %s465_s1 }
  0xe7   : > { %p3004_p0 = scmp.ne.s32.totalorder %s3592_s23, %s3003_s29  ;;  %s3008_s28 = scalar_lea.hbm %s4087_s4, 32 }
  0xe8   : > { %p3009_p2 = scmp.lt.u32.totalorder %s3592_s23, %s4087_s4  ;;  %p3010_p13 = scmp.lt.u32.totalorder %s3008_s28, %s3003_s29 }
  0xe9   : > { %p3006_p4 = pnand %p3004_p0, %p4141_p10  ;;  %p3012_p3 = scmp.lt.u32.totalorder %s3003_s29, %s3592_s23 }
  0xea   : > { %p3011_p12 = por %p3010_p13, %p3009_p2 }
  0xeb   : > { %p3007_p1 = pneg %p3006_p4 }
  0xec   : > { %p3013_p5 = por %p3012_p3, %p3011_p12 }
  0xee   : > { %p3014_p11 = pnand %p3013_p5, %p3007_p1 }
  0xf0   : > { %3017 = shalt.err (!%p3014_p11)
}
  0xf1   : > { %s3018_s25 = scalar_lea.vmem %s466_s1, 16  ;;  %s3236_s30 = smov [#allocation11]  }
  0xf2   : > { %p3019_p9 = scmp.ne.s32.totalorder %s466_s1, %s3018_s25  ;;  %s3023_s5 = sshll.u32 %s3236_s30, 4  ;;  %s3024_s5 = int_to_ptr.vmem [resolvable:$false] %s3023_s5 }
  0xf3   : > { %s3025_s8 = scalar_lea.vmem %s3024_s5, 32  ;;  %p3026_p0 = scmp.lt.s32.totalorder %s466_s1, %s3024_s5 }
  0xf4   : > { %p3021_p6 = pnand %p3019_p9, %p4141_p10  ;;  %p3027_p4 = scmp.lt.s32.totalorder %s3025_s8, %s3018_s25 }
  0xf6   : > { %p3022_p8 = pneg %p3021_p6  ;;  %p3028_p7 = por %p3027_p4, %p3026_p0 }
  0xf8   : > { %p3029_p2 = pnand %p3028_p7, %p3022_p8 }
  0xfa   : > { %3032 = shalt.err (!%p3029_p2)
}
  0xfb   : > { %p4144_p13 = scmp.ne.s32.totalorder %s4128_s15, 0  ;;  %s4145_s13 = scalar_lea.sflag [#allocation10], %s3353_s26 }
  0xfc   : > { %s492_s17 = scalar_lea.vmem [#allocation14], %s3356_s27  ;;  %s4146_s28 = sld [smem:[#allocation39_spill]] }
  0xfd   : > { %2626 = dma.hbm_to_vmem [thread:$0]  (!%p4144_p13), %s3592_s23, 16, %s466_s1, %s4145_s13  }
  0xfe   : > { %s499_s29 = sshll.u32 %s492_s17, 4  ;;  %s3033_s7 = scalar_lea.hbm %s3643_s3, 16  ;;  %s500_s29 = int_to_ptr.vmem [resolvable:$true] %s499_s29 }
  0xff   : > { %p3034_p7 = scmp.ne.s32.totalorder %s3643_s3, %s3033_s7  ;;  %s3038_s5 = scalar_lea.hbm %s4089_s6, 32 }
 0x100   : > { %p3039_p3 = scmp.lt.u32.totalorder %s3643_s3, %s4089_s6  ;;  %p3040_p5 = scmp.lt.u32.totalorder %s3038_s5, %s3033_s7 }
 0x101   : > { %p3036_p1 = pnand %p3034_p7, %p4141_p10  ;;  %p3042_p9 = scmp.lt.u32.totalorder %s3033_s7, %s3643_s3 }
 0x102   : > { %s3669_s24 = scalar_lea.hbm %s4146_s28, %s3421_s20  ;;  %p3041_p11 = por %p3040_p5, %p3039_p3 }
 0x103   : > { %p3037_p12 = pneg %p3036_p1 }
 0x104   : > { %p3043_p6 = por %p3042_p9, %p3041_p11 }
 0x106   : > { %p3044_p8 = pnand %p3043_p6, %p3037_p12 }
 0x108   : > { %3047 = shalt.err (!%p3044_p8)
}
 0x109   : > { %s3048_s23 = scalar_lea.vmem %s500_s29, 16  ;;  %s3237_s1 = smov [#allocation14]  }
 0x10a   : > { %p3049_p0 = scmp.ne.s32.totalorder %s500_s29, %s3048_s23  ;;  %s3053_s13 = sshll.u32 %s3237_s1, 4  ;;  %s3054_s13 = int_to_ptr.vmem [resolvable:$false] %s3053_s13 }
 0x10b   : > { %s3055_s17 = scalar_lea.vmem %s3054_s13, 32  ;;  %p3056_p7 = scmp.lt.s32.totalorder %s500_s29, %s3054_s13 }
 0x10c   : > { %p3051_p4 = pnand %p3049_p0, %p4141_p10  ;;  %p3057_p1 = scmp.lt.s32.totalorder %s3055_s17, %s3048_s23 }
 0x10e   : > { %p3052_p2 = pneg %p3051_p4  ;;  %p3058_p13 = por %p3057_p1, %p3056_p7 }
 0x110   : > { %p3059_p3 = pnand %p3058_p13, %p3052_p2 }
 0x112   : > { %3062 = shalt.err (!%p3059_p3)
}
 0x113   : > { %p4147_p5 = scmp.ne.s32.totalorder %s4128_s15, 0  ;;  %s4148_s0 = scalar_lea.sflag [#allocation13], %s3353_s26 }
 0x114   : > { %s530_s10 = scalar_lea.vmem [#allocation17], %s3356_s27  ;;  %s4149_s30 = sld [smem:[#allocation40_spill]] }
 0x115   : > { %2632 = dma.hbm_to_vmem [thread:$0]  (!%p4147_p5), %s3643_s3, 16, %s500_s29, %s4148_s0  }
 0x116   : > { %s537_s16 = sshll.u32 %s530_s10, 4  ;;  %s3063_s8 = scalar_lea.hbm %s3669_s24, 16  ;;  %s538_s16 = int_to_ptr.vmem [resolvable:$true] %s537_s16 }
 0x117   : > { %p3064_p13 = scmp.ne.s32.totalorder %s3669_s24, %s3063_s8  ;;  %s3068_s13 = scalar_lea.hbm %s4146_s28, 32 }
 0x118   : > { %p3069_p9 = scmp.lt.u32.totalorder %s3669_s24, %s4146_s28  ;;  %p3070_p6 = scmp.lt.u32.totalorder %s3068_s13, %s3063_s8 }
 0x119   : > { %p3066_p12 = pnand %p3064_p13, %p4141_p10  ;;  %p3072_p0 = scmp.lt.u32.totalorder %s3063_s8, %s3669_s24 }
 0x11a   : > { %s3695_s5 = scalar_lea.hbm %s4149_s30, %s3421_s20  ;;  %p3071_p8 = por %p3070_p6, %p3069_p9 }
 0x11b   : > { %p3067_p11 = pneg %p3066_p12 }
 0x11c   : > { %p3073_p4 = por %p3072_p0, %p3071_p8 }
 0x11e   : > { %p3074_p2 = pnand %p3073_p4, %p3067_p11 }
 0x120   : > { %3077 = shalt.err (!%p3074_p2)
}
 0x121   : > { %s3078_s20 = scalar_lea.vmem %s538_s16, 16  ;;  %s3238_s3 = smov [#allocation17]  }
 0x122   : > { %p3079_p7 = scmp.ne.s32.totalorder %s538_s16, %s3078_s20  ;;  %s3083_s29 = sshll.u32 %s3238_s3, 4  ;;  %s3084_s29 = int_to_ptr.vmem [resolvable:$false] %s3083_s29 }
 0x123   : > { %s3085_s0 = scalar_lea.vmem %s3084_s29, 32  ;;  %p3086_p13 = scmp.lt.s32.totalorder %s538_s16, %s3084_s29 }
 0x124   : > { %p3081_p1 = pnand %p3079_p7, %p4141_p10  ;;  %p3087_p12 = scmp.lt.s32.totalorder %s3085_s0, %s3078_s20 }
 0x126   : > { %p3082_p3 = pneg %p3081_p1  ;;  %p3088_p5 = por %p3087_p12, %p3086_p13 }
 0x128   : > { %p3089_p6 = pnand %p3088_p5, %p3082_p3 }
 0x12a   : > { %3092 = shalt.err (!%p3089_p6)
}
 0x12b   : > { %p4150_p9 = scmp.ne.s32.totalorder %s4128_s15, 0  ;;  %s4151_s2 = scalar_lea.sflag [#allocation16], %s3353_s26 }
 0x12c   : > { %s568_s10 = scalar_lea.vmem [#allocation20], %s3356_s27  ;;  %s3093_s25 = scalar_lea.hbm %s3695_s5, 16 }
 0x12d   : > { %2638 = dma.hbm_to_vmem [thread:$0]  (!%p4150_p9), %s3669_s24, 16, %s538_s16, %s4151_s2  }
 0x12e   : > { %s575_s7 = sshll.u32 %s568_s10, 4  ;;  %p3094_p11 = scmp.ne.s32.totalorder %s3695_s5, %s3093_s25  ;;  %s576_s7 = int_to_ptr.vmem [resolvable:$true] %s575_s7 }
 0x12f   : > { %s3098_s1 = scalar_lea.hbm %s4149_s30, 32  ;;  %p3099_p0 = scmp.lt.u32.totalorder %s3695_s5, %s4149_s30 }
 0x130   : > { %p3096_p5 = pnand %p3094_p11, %p4141_p10  ;;  %p3100_p4 = scmp.lt.u32.totalorder %s3098_s1, %s3093_s25 }
 0x131   : > { %p3102_p7 = scmp.lt.u32.totalorder %s3093_s25, %s3695_s5 }
 0x132   : > { %p3097_p8 = pneg %p3096_p5  ;;  %p3101_p2 = por %p3100_p4, %p3099_p0 }
 0x134   : > { %p3103_p1 = por %p3102_p7, %p3101_p2 }
 0x136   : > { %p3104_p3 = pnand %p3103_p1, %p3097_p8 }
 0x138   : > { %3107 = shalt.err (!%p3104_p3)
}
 0x139   : > { %s3108_s27 = scalar_lea.vmem %s576_s7, 16  ;;  %s3239_s24 = smov [#allocation20]  }
 0x13a   : > { %p3109_p13 = scmp.ne.s32.totalorder %s576_s7, %s3108_s27  ;;  %s3113_s16 = sshll.u32 %s3239_s24, 4  ;;  %s3114_s16 = int_to_ptr.vmem [resolvable:$false] %s3113_s16 }
 0x13b   : > { %s3115_s20 = scalar_lea.vmem %s3114_s16, 32  ;;  %p3116_p11 = scmp.lt.s32.totalorder %s576_s7, %s3114_s16 }
 0x13c   : > { %p3111_p12 = pnand %p3109_p13, %p4141_p10  ;;  %p3117_p5 = scmp.lt.s32.totalorder %s3115_s20, %s3108_s27 }
 0x13e   : > { %p3112_p6 = pneg %p3111_p12  ;;  %p3118_p9 = por %p3117_p5, %p3116_p11 }
 0x140   : > { %p3119_p0 = pnand %p3118_p9, %p3112_p6 }
 0x142   : > { %3122 = shalt.err (!%p3119_p0)
}
 0x143   : > { %p4152_p4 = scmp.ne.s32.totalorder %s4128_s15, 0  ;;  %s4153_s3 = scalar_lea.sflag [#allocation19], %s3353_s26 }
 0x144   : > { %p4154_p8 = scmp.ne.s32.totalorder %s4137_s14, 0 }
 0x145   : > { %2644 = dma.hbm_to_vmem [thread:$0]  (!%p4152_p4), %s3695_s5, 16, %s576_s7, %s4153_s3  }
 0x146   : > { %584 = sbr.rel (%p4154_p8) target bundleno = 3077 (0xc05), region = 64  ;;  %p4155_p10 = scmp.eq.s32.totalorder (!%p4154_p8), %s3552_s19, 0 }
 0x14d   : > { %3174 = dma.done.wait (%p4155_p10), [#allocation4], 256   ;;  %p4156_p2 = pmov %p4155_p10 }
 0x14e   : > { %s590_s12 = sand.u32 1, %s3552_s19   ;;  %s3744_s29 = sand.u32 1, %s3207_s18  }
 0x14f   : > { %3176 = vsyncadd (%p4156_p2), [#allocation4], 4294967040  ;;  %s3747_s15 = sshll.u32 %s3744_s29, 4  ;;  %s591_s26 = scalar_lea.sflag [#allocation7], %s590_s12 }
 0x150   : > { %s594_s5 = scalar_lea.vmem [#allocation6], %s3747_s15  ;;  %p4157_p9 = scmp.ne.s32.totalorder %s4136_s11, 0 }
 0x152   : > { %3178 = dma.done.wait (%p4157_p9), %s591_s26, 272  }
 0x153   : > { %3180 = vsyncadd (%p4157_p9), %s591_s26, 4294967024  ;;  %s602_s14 = scalar_lea.vmem [#allocation8], %s3744_s29  ;;  %s608_s0 = scalar_lea.sflag [#allocation10], %s590_s12 }
 0x154   : > { %s611_s2 = scalar_lea.vmem [#allocation9], %s3747_s15 }
 0x155   : > { %3182 = dma.done.wait (%p4157_p9), %s608_s0, 272  }
 0x156   : > { %3184 = vsyncadd (%p4157_p9), %s608_s0, 4294967024  ;;  %s619_s10 = scalar_lea.vmem [#allocation11], %s3744_s29  ;;  %s625_s7 = scalar_lea.sflag [#allocation13], %s590_s12 }
 0x157   : > { %s627_s25 = scalar_lea.vmem [#allocation12], %s3744_s29 }
 0x158   : > { %3186 = dma.done.wait (%p4157_p9), %s625_s7, 32  }
 0x159   : > { %3188 = vsyncadd (%p4157_p9), %s625_s7, 4294967264  ;;  %s635_s8 = scalar_lea.vmem [#allocation14], %s3744_s29  ;;  %s641_s23 = scalar_lea.sflag [#allocation16], %s590_s12 }
 0x15a   : > { %s644_s1 = scalar_lea.vmem [#allocation15], %s3747_s15 }
 0x15b   : > { %3190 = dma.done.wait (%p4157_p9), %s641_s23, 272  }
 0x15c   : > { %3192 = vsyncadd (%p4157_p9), %s641_s23, 4294967024  ;;  %s2357_s13 = sshll.u32 %s3744_s29, 5  ;;  %s652_s17 = scalar_lea.vmem [#allocation17], %s3744_s29 }
 0x15d   : > { %s658_s27 = scalar_lea.sflag [#allocation19], %s590_s12  ;;  %s3774_s24 = scalar_lea.vmem [#allocation18], %s2357_s13 }
 0x15e   : > { %3194 = dma.done.wait (%p4157_p9), %s658_s27, 528  }
 0x15f   : > { %3196 = vsyncadd (%p4157_p9), %s658_s27, 4294966768  ;;  %s669_s16 = scalar_lea.vmem [#allocation20], %s3744_s29  ;;  %s4158_s20 = sld [smem:[#allocation30_spill]] }
 0x165   : > { %p2358_p7 = scmp.ne.s32.totalorder %s4158_s20, 0 }
 0x166   : > { %v749_v0 = vld [vmem:[#allocation3] sm:$0xff] (!%p2358_p7)  ;;  %vm751_vm0 = vcmask (!%p2358_p7), 261120   ;;  %v750_v1 = vld [vmem:[#allocation3 + $0x8] sm:$0xff] (!%p2358_p7) }
 0x167   : > { %748 = sbr.rel (%p2358_p7) target bundleno = 366 (0x16e), region = 112  ;;  %752 = vst.msk [vmem:[#allocation2] sm:$0xff] (!%p2358_p7), %vm751_vm0, %v749_v0  ;;  %753 = vst.msk [vmem:[#allocation2 + $0x8] sm:$0xff] (!%p2358_p7), %vm751_vm0, %v750_v1 }
 0x16e PF: > { %v2745_v2 = vld [vmem:[%s594_s5] sm:$0xff]   ;;  %v3240_v3 = vmov 0.0   ;;  %v2746_v4 = vld [vmem:[%s594_s5 + $0x8] sm:$0xff]   ;;  %vm3241_vm1 = vmmov 0   ;;  %vm780_vm2 = vcmask 261120   ;;  %s3242_s11 = smov 104  }
 0x16f   : > { %2450 = vmatprep.subr.bf16.mxu0 %v3240_v3  ;;  %2458 = vmatprep.subr.bf16.mxu1 %v3240_v3  ;;  %v3790_v5 = vld [vmem:[#allocation2] sm:$0xff]  ;;  %v3792_v6 = vld [vmem:[#allocation2 + $0x8] sm:$0xff]  ;;  %s3243_s3 = smov 120   ;;  %s3244_s12 = smov 96   ;;  %vm856_vm3 = vcmask 64512   ;;  %vm1347_vm4 = vcmask 1043456  }
 0x170   : > { %2451 = vmatpush3.bf16.msra.mxu0 %v2745_v2  ;;  %2454 = vmatprep.mubr.msk.bf16.mxu0 %vm3241_vm1, %v3240_v3  ;;  %v756_v7 = vpack.c.bf16 %v3792_v6, %v3790_v5  ;;  %v2359_v8 = vld [vmem:[%s602_s14] ss:$0 sm:$0xff]  ;;  %s3245_s26 = smov 112   ;;  %s3246_s5 = smov 64   ;;  %vm1753_vm5 = vcmask 130048   ;;  %vm1756_vm6 = vcmask 195584  }
 0x171   : > { %2452 = vmatprep.subr.bf16.mxu0 %v3240_v3  ;;  %2460 = vmatprep.mubr.msk.bf16.mxu1 %vm3241_vm1, %v3240_v3  ;;  %s3247_s14 = smov 8   ;;  %s3248_s0 = smov 16   ;;  %vm1984_vm7 = vcmask 523264  }
 0x172   : > { %s3249_s7 = smov 24   ;;  %s4159_s29 = sld [smem:[#allocation30_spill]] }
 0x174   : > { %2453 = vmatpush3.bf16.msra.mxu0 %v2746_v4 }
 0x175   : > { %2464 = vmatprep.subr.bf16.mxu0 %v3240_v3 }
 0x177   : > { %2455 = vmatmul.mubr.msk.bf16.vlgmr.msra.gmra.mrb[0].mxu0 %vm780_vm2, %v756_v7 }
 0x178   : > { %2466 = vmatprep.mubr.msk.bf16.mxu0 %vm3241_vm1, %v3240_v3  ;;  %p2395_p1 = scmp.ne.s32.totalorder %s4159_s29, 1 }
 0x24a   : > { %v818_v9 = vpop.f32.mrb[0].mxu0 }
 0x24b   : > { %v2456_v10 = vpop.f32.mrb[1].mxu0  ;;  %v819_v12 = vadd.f32 %v2359_v8, %v818_v9 }
 0x24c   : > { %v821_v11 = vpop.f32.mrb[2].mxu0 }
 0x24d   : > { %v822_v13 = vadd.f32 %v2359_v8, %v821_v11  ;;  %v2457_v14 = vpop.f32.mrb[3].mxu0  ;;  %v845_v16 = vpack.c.bf16 %v819_v12, %v819_v12 }
 0x24f   : > { %v2725_v15 = vpack.i.bf16 %v822_v13, %v819_v12  ;;  %v846_v17 = vpack.c.bf16 %v822_v13, %v822_v13 }
 0x251   : > { %2726 = vrot.lane.b32.xlu1 %v2725_v15, %s3242_s11  ;;  %2716 = vrot.lane.b32.xlu0 %v2725_v15, %s3243_s3 }
 0x255   : > { %854 = vrot.lane.b32.xlu1 %v845_v16, %s3244_s12  ;;  %2721 = vrot.lane.b32.xlu0 %v2725_v15, %s3245_s26 }
 0x259   : > { %904 = vrot.lane.b32.xlu0 %v846_v17, %s3244_s12 }
 0x2c3   : > { %v2727_v18 = vpop.permute.xlu1 %2726  ;;  %v2717_v19 = vpop.permute.xlu0 %2716 }
 0x2c4   : > { %v2719_v20 = vunpack.i.h.bf16 %v2717_v19  ;;  %v2718_v21 = vunpack.i.l.bf16 %v2717_v19  ;;  %v2728_v29 = vunpack.i.l.bf16 %v2727_v18  ;;  %v2729_v32 = vunpack.i.h.bf16 %v2727_v18 }
 0x2c6   : > { %v3807_v22 = vpack.c.bf16 %v2719_v20, %v2719_v20  ;;  %v3809_v23 = vpack.c.bf16 %v2718_v21, %v2718_v21  ;;  %v3826_v35 = vpack.c.bf16 %v2728_v29, %v2728_v29  ;;  %v3829_v36 = vpack.c.bf16 %v2729_v32, %v2729_v32 }
 0x2c7   : > { %v855_v24 = vpop.permute.xlu1 %854  ;;  %v2722_v25 = vpop.permute.xlu0 %2721 }
 0x2c8   : > { %v2724_v26 = vunpack.i.h.bf16 %v2722_v25  ;;  %v2723_v27 = vunpack.i.l.bf16 %v2722_v25  ;;  %953 = vrot.lane.b32.xlu1 %v3809_v23, %s3244_s12  ;;  %1002 = vrot.lane.b32.xlu0 %v3807_v22, %s3244_s12  ;;  %v861_v28 = vsel %vm856_vm3, %v855_v24, 0 }
 0x2c9   : > { %2459 = vmatpush3.bf16.xpose.msra.mxu1 %v861_v28 }
 0x2ca   : > { %v3816_v30 = vpack.c.bf16 %v2724_v26, %v2724_v26  ;;  %v3818_v31 = vpack.c.bf16 %v2723_v27, %v2723_v27  ;;  %2470 = vmatprep.subr.bf16.mxu1 %v3240_v3 }
 0x2cb   : > { %v905_v33 = vpop.permute.xlu0 %904 }
 0x2cc   : > { %v910_v34 = vsel %vm856_vm3, %v905_v33, 0  ;;  %1051 = vrot.lane.b32.xlu1 %v3818_v31, %s3244_s12  ;;  %1100 = vrot.lane.b32.xlu0 %v3816_v30, %s3244_s12 }
 0x2cd   : > { %2465 = vmatpush3.bf16.xpose.msra.mxu0 %v910_v34 }
 0x2ce   : > { %2476 = vmatprep.subr.bf16.mxu0 %v3240_v3 }
 0x2d0   : > { %2461 = vmatmul.mubr.msk.bf16.vlgmr.msra.gmra.mrb[0].mxu1 %vm856_vm3, %v845_v16  ;;  %1149 = vrot.lane.b32.xlu1 %v3826_v35, %s3244_s12 }
 0x2d1   : > { %1198 = vrot.lane.b32.xlu0 %v3829_v36, %s3244_s12  ;;  %2472 = vmatprep.mubr.msk.bf16.mxu1 %vm3241_vm1, %v3240_v3 }
 0x2d4   : > { %1391 = vrot.lane.b32.xlu1 %v846_v17, %s3246_s5  ;;  %2467 = vmatmul.mubr.msk.bf16.vlgmr.msra.gmra.mrb[4].mxu0 %vm856_vm3, %v846_v17 }
 0x2d5   : > { %1342 = vrot.lane.b32.xlu0 %v845_v16, %s3246_s5  ;;  %2478 = vmatprep.mubr.msk.bf16.mxu0 %vm3241_vm1, %v3240_v3 }
 0x33a   : > { %v954_v37 = vpop.permute.xlu1 %953  ;;  %v1003_v38 = vpop.permute.xlu0 %1002 }
 0x33b   : > { %v959_v39 = vsel %vm856_vm3, %v954_v37, 0  ;;  %v1008_v40 = vsel %vm856_vm3, %v1003_v38, 0 }
 0x33c   : > { %2471 = vmatpush3.bf16.xpose.msra.mxu1 %v959_v39  ;;  %2477 = vmatpush3.bf16.xpose.msra.mxu0 %v1008_v40 }
 0x33d   : > { %2482 = vmatprep.subr.bf16.mxu1 %v3240_v3  ;;  %2488 = vmatprep.subr.bf16.mxu0 %v3240_v3 }
 0x33e   : > { %v1052_v41 = vpop.permute.xlu1 %1051  ;;  %v1101_v42 = vpop.permute.xlu0 %1100 }
 0x33f   : > { %v1057_v43 = vsel %vm856_vm3, %v1052_v41, 0  ;;  %v1106_v44 = vsel %vm856_vm3, %v1101_v42, 0 }
 0x342   : > { %v1150_v45 = vpop.permute.xlu1 %1149 }
 0x343   : > { %2473 = vmatmul.mubr.msk.bf16.vlgmr.msra.gmra.mrb[4].mxu1 %vm856_vm3, %v3809_v23  ;;  %2479 = vmatmul.mubr.msk.bf16.vlgmr.msra.gmra.mrb[8].mxu0 %vm856_vm3, %v3807_v22  ;;  %v1199_v46 = vpop.permute.xlu0 %1198  ;;  %v1155_v47 = vsel %vm856_vm3, %v1150_v45, 0 }
 0x344   : > { %2483 = vmatpush3.bf16.xpose.msra.mxu1 %v1057_v43  ;;  %2489 = vmatpush3.bf16.xpose.msra.mxu0 %v1106_v44  ;;  %v1204_v48 = vsel %vm856_vm3, %v1199_v46, 0 }
 0x345   : > { %2484 = vmatprep.mubr.msk.bf16.mxu1 %vm3241_vm1, %v3240_v3  ;;  %2490 = vmatprep.mubr.msk.bf16.mxu0 %vm3241_vm1, %v3240_v3 }
 0x346   : > { %2494 = vmatprep.subr.bf16.mxu1 %v3240_v3  ;;  %2500 = vmatprep.subr.bf16.mxu0 %v3240_v3  ;;  %v1392_v49 = vpop.permute.xlu1 %1391 }
 0x347   : > { %v1343_v50 = vpop.permute.xlu0 %1342  ;;  %v1397_v51 = vsel %vm1347_vm4, %v1392_v49, 0 }
 0x348   : > { %v1349_v52 = vsel %vm1347_vm4, %v1343_v50, 0 }
 0x34b   : > { %2485 = vmatmul.mubr.msk.bf16.vlgmr.msra.gmra.mrb[8].mxu1 %vm856_vm3, %v3818_v31  ;;  %2491 = vmatmul.mubr.msk.bf16.vlgmr.msra.gmra.mrb[12].mxu0 %vm856_vm3, %v3816_v30 }
 0x34c   : > { %2495 = vmatpush3.bf16.xpose.msra.mxu1 %v1155_v47  ;;  %2501 = vmatpush3.bf16.xpose.msra.mxu0 %v1204_v48 }
 0x34d   : > { %2496 = vmatprep.mubr.msk.bf16.mxu1 %vm3241_vm1, %v3240_v3  ;;  %2502 = vmatprep.mubr.msk.bf16.mxu0 %vm3241_vm1, %v3240_v3 }
 0x34e   : > { %2506 = vmatprep.subr.bf16.mxu1 %v3240_v3  ;;  %2512 = vmatprep.subr.bf16.mxu0 %v3240_v3 }
 0x353   : > { %2497 = vmatmul.mubr.msk.bf16.vlgmr.msra.gmra.mrb[12].mxu1 %vm856_vm3, %v3826_v35  ;;  %2503 = vmatmul.mubr.msk.bf16.vlgmr.msra.gmra.mrb[16].mxu0 %vm856_vm3, %v3829_v36 }
 0x354   : > { %2507 = vmatpush3.bf16.msra.mxu1 %v1349_v52  ;;  %2513 = vmatpush3.bf16.msra.mxu0 %v1397_v51 }
 0x355   : > { %2508 = vmatprep.mubr.msk.bf16.mxu1 %vm3241_vm1, %v3240_v3  ;;  %2514 = vmatprep.mubr.msk.bf16.mxu0 %vm3241_vm1, %v3240_v3 }
 0x356   : > { %2518 = vmatprep.subr.bf16.mxu1 %v3240_v3  ;;  %2524 = vmatprep.subr.bf16.mxu0 %v3240_v3 }
 0x3a3   : > { %v897_v53 = vpop.f32.mrb[0].mxu1 }
 0x3a4   : > { %v2462_v54 = vpop.f32.mrb[1].mxu1  ;;  %v1246_v55 = vsel %vm856_vm3, %v897_v53, -inf }
 0x3a5   : > { %v900_v56 = vpop.f32.mrb[2].mxu1  ;;  %1247 = vmax.xlane.f32.xlu1 %v1246_v55 }
 0x3a6   : > { %v2463_v57 = vpop.f32.mrb[3].mxu1 }
 0x3a7   : > { %v946_v58 = vpop.f32.mrb[4].mxu0 }
 0x3a8   : > { %v2468_v59 = vpop.f32.mrb[5].mxu0  ;;  %v1249_v60 = vsel %vm856_vm3, %v946_v58, -inf }
 0x3a9   : > { %1250 = vmax.xlane.f32.xlu0 %v1249_v60  ;;  %v949_v61 = vpop.f32.mrb[6].mxu0 }
 0x3aa   : > { %v2469_v62 = vpop.f32.mrb[7].mxu0 }
 0x416   : > { %v995_v63 = vpop.f32.mrb[4].mxu1  ;;  %v1044_v0 = vpop.f32.mrb[8].mxu0 }
 0x417   : > { %v2474_v1 = vpop.f32.mrb[5].mxu1  ;;  %v2480_v2 = vpop.f32.mrb[9].mxu0  ;;  %v1252_v4 = vsel %vm856_vm3, %v995_v63, -inf  ;;  %v1255_v7 = vsel %vm856_vm3, %v1044_v0, -inf }
 0x418   : > { %v998_v8 = vpop.f32.mrb[6].mxu1  ;;  %1253 = vmax.xlane.f32.xlu0 %v1252_v4  ;;  %1256 = vmax.xlane.f32.xlu1 %v1255_v7  ;;  %v1047_v9 = vpop.f32.mrb[10].mxu0 }
 0x419   : > { %v2475_v10 = vpop.f32.mrb[7].mxu1  ;;  %v2481_v11 = vpop.f32.mrb[11].mxu0 }
 0x41e   : > { %v3887_v12 = vpop.f32.mrb[8].mxu1  ;;  %v1142_v13 = vpop.f32.mrb[12].mxu0 }
 0x41f   : > { %v2486_v14 = vpop.f32.mrb[9].mxu1  ;;  %v2492_v15 = vpop.f32.mrb[13].mxu0  ;;  %v1258_v16 = vsel %vm856_vm3, %v3887_v12, -inf  ;;  %v1261_v17 = vsel %vm856_vm3, %v1142_v13, -inf }
 0x420   : > { %v1096_v18 = vpop.f32.mrb[10].mxu1  ;;  %1259 = vmax.xlane.f32.xlu0 %v1258_v16  ;;  %1262 = vmax.xlane.f32.xlu1 %v1261_v17  ;;  %v1145_v19 = vpop.f32.mrb[14].mxu0 }
 0x421   : > { %v2487_v20 = vpop.f32.mrb[11].mxu1  ;;  %v2493_v21 = vpop.f32.mrb[15].mxu0 }
 0x426   : > { %v3892_v24 = vpop.f32.mrb[12].mxu1  ;;  %v1240_v25 = vpop.f32.mrb[16].mxu0 }
 0x427   : > { %v2498_v26 = vpop.f32.mrb[13].mxu1  ;;  %v2504_v27 = vpop.f32.mrb[17].mxu0  ;;  %v1264_v28 = vsel %vm856_vm3, %v3892_v24, -inf  ;;  %v1267_v29 = vsel %vm856_vm3, %v1240_v25, -inf }
 0x428   : > { %v1194_v32 = vpop.f32.mrb[14].mxu1  ;;  %1265 = vmax.xlane.f32.xlu0 %v1264_v28  ;;  %1268 = vmax.xlane.f32.xlu1 %v1267_v29  ;;  %v1243_v33 = vpop.f32.mrb[18].mxu0 }
 0x429   : > { %v2499_v34 = vpop.f32.mrb[15].mxu1  ;;  %v2505_v37 = vpop.f32.mrb[19].mxu0 }
 0x432   : > { %v1248_v38 = vpop.xlane.xlu1 %1247 }
 0x433   : > { %v1270_v40 = vsub.f32 %v897_v53, %v1248_v38 }
 0x435   : > { %v1278_v42 = vmul.f32 1.442695, %v1270_v40 }
 0x436   : > { %v1251_v39 = vpop.xlane.xlu0 %1250 }
 0x437   : > { %v1271_v41 = vsub.f32 %v946_v58, %v1251_v39  ;;  %2755 = vpow2.f32 %v1278_v42 }
 0x439   : > { %1439 = vrot.lane.b32.xlu1 %v3809_v23, %s3246_s5  ;;  %v1280_v43 = vmul.f32 1.442695, %v1271_v41 }
 0x43b   : > { %2757 = vpow2.f32 %v1280_v43 }
 0x43e   : > { %1487 = vrot.lane.b32.xlu0 %v3807_v22, %s3246_s5 }
 0x441   : > { %v2756_v44 = vpop.eup %2755 }
 0x442   : > { %v1294_v46 = vsel %vm856_vm3, %v2756_v44, 0.0 }
 0x445   : > { %v2758_v45 = vpop.eup %2757 }
 0x446   : > { %v1297_v47 = vsel %vm856_vm3, %v2758_v45, 0.0 }
 0x45d   : > { %1295 = vadd.xlane.f32.xlu0 %v1294_v46  ;;  %1298 = vadd.xlane.f32.xlu1 %v1297_v47 }
 0x46e   : > { %1535 = vrot.lane.b32.xlu1 %v3818_v31, %s3246_s5 }
 0x4a5   : > { %v1254_v22 = vpop.xlane.xlu0 %1253  ;;  %v1257_v23 = vpop.xlane.xlu1 %1256 }
 0x4a6   : > { %v1272_v48 = vsub.f32 %v995_v63, %v1254_v22  ;;  %v1273_v49 = vsub.f32 %v1044_v0, %v1257_v23 }
 0x4a8   : > { %v1282_v50 = vmul.f32 1.442695, %v1272_v48  ;;  %v1284_v51 = vmul.f32 1.442695, %v1273_v49 }
 0x4aa   : > { %2759 = vpow2.f32 %v1282_v50 }
 0x4ab   : > { %2761 = vpow2.f32 %v1284_v51 }
 0x4ad   : > { %v1263_v52 = vpop.xlane.xlu1 %1262  ;;  %v1260_v1 = vpop.xlane.xlu0 %1259 }
 0x4ae   : > { %v1275_v53 = vsub.f32 %v1142_v13, %v1263_v52  ;;  %v1274_v2 = vsub.f32 %v3887_v12, %v1260_v1 }
 0x4b0   : > { %v1288_v54 = vmul.f32 1.442695, %v1275_v53  ;;  %v1286_v7 = vmul.f32 1.442695, %v1274_v2 }
 0x4b2   : > { %2763 = vpow2.f32 %v1288_v54 }
 0x4b4   : > { %v3905_v55 = vpop.eup %2759 }
 0x4b5   : > { %v3907_v56 = vpop.eup %2761  ;;  %v1269_v57 = vpop.xlane.xlu1 %1268  ;;  %v1300_v31 = vsel %vm856_vm3, %v3905_v55, 0.0 }
 0x4b6   : > { %v1277_v58 = vsub.f32 %v1240_v25, %v1269_v57  ;;  %1301 = vadd.xlane.f32.xlu0 %v1300_v31  ;;  %v1303_v59 = vsel %vm856_vm3, %v3907_v56, 0.0  ;;  %v1266_v4 = vpop.xlane.xlu0 %1265 }
 0x4b7   : > { %1304 = vadd.xlane.f32.xlu1 %v1303_v59  ;;  %v1276_v8 = vsub.f32 %v3892_v24, %v1266_v4 }
 0x4b8   : > { %v1292_v60 = vmul.f32 1.442695, %v1277_v58 }
 0x4b9   : > { %v1290_v9 = vmul.f32 1.442695, %v1276_v8  ;;  %v1440_v11 = vpop.permute.xlu1 %1439 }
 0x4ba   : > { %2765 = vpow2.f32 %v1292_v60  ;;  %v1488_v10 = vpop.permute.xlu0 %1487  ;;  %v1445_v24 = vsel %vm1347_vm4, %v1440_v11, 0 }
 0x4bb   : > { %2767 = vpow2.f32 %v1286_v7  ;;  %v1493_v25 = vsel %vm1347_vm4, %v1488_v10, 0 }
 0x4bc   : > { %v3913_v61 = vpop.eup %2763  ;;  %2769 = vpow2.f32 %v1290_v9 }
 0x4bd   : > { %v1309_v62 = vsel %vm856_vm3, %v3913_v61, 0.0 }
 0x4be   : > { %1310 = vadd.xlane.f32.xlu1 %v1309_v62 }
 0x4c4   : > { %v3917_v63 = vpop.eup %2765 }
 0x4c5   : > { %v1315_v0 = vsel %vm856_vm3, %v3917_v63, 0.0  ;;  %v3927_v13 = vpop.eup %2767 }
 0x4c6   : > { %1316 = vadd.xlane.f32.xlu1 %v1315_v0  ;;  %v3931_v12 = vpop.eup %2769 }
 0x4cc   : > { %1583 = vrot.lane.b32.xlu0 %v3816_v30, %s3246_s5  ;;  %v1306_v30 = vsel %vm856_vm3, %v3927_v13, 0.0 }
 0x4d7   : > { %1631 = vrot.lane.b32.xlu1 %v3826_v35, %s3246_s5  ;;  %v1312_v35 = vsel %vm856_vm3, %v3931_v12, 0.0 }
 0x4ea   : > { %v1296_v14 = vpop.xlane.xlu0 %1295  ;;  %v1299_v15 = vpop.xlane.xlu1 %1298 }
 0x4eb   : > { %2771 = vrcp.f32 %v1296_v14  ;;  %1307 = vadd.xlane.f32.xlu0 %v1306_v30 }
 0x4ec   : > { %2773 = vrcp.f32 %v1299_v15 }
 0x4ee   : > { %v1536_v26 = vpop.permute.xlu1 %1535 }
 0x4ef   : > { %1313 = vadd.xlane.f32.xlu0 %v1312_v35  ;;  %v1541_v41 = vsel %vm1347_vm4, %v1536_v26, 0 }
 0x4f5   : > { %v2772_v16 = vpop.eup %2771 }
 0x4f6   : > { %v2774_v17 = vpop.eup %2773  ;;  %v1326_v18 = vmul.f32 %v2772_v16, %v2756_v44  ;;  %v2747_v16 = vld [vmem:[%s611_s2] sm:$0xff]  }
 0x4f7   : > { %v1327_v19 = vmul.f32 %v2774_v17, %v2758_v45 }
 0x4f8   : > { %v1334_v20 = vpack.c.bf16 %v1326_v18, %v1326_v18 }
 0x4f9   : > { %v1335_v21 = vpack.c.bf16 %v1327_v19, %v1327_v19 }
 0x4fa   : > { %2509 = vmatmul.mubr.msk.bf16.vlgmr.msra.gmra.mrb[16].mxu1 %vm856_vm3, %v1334_v20 }
 0x4fb   : > { %2515 = vmatmul.mubr.msk.bf16.vlgmr.msra.gmra.mrb[20].mxu0 %vm856_vm3, %v1335_v21  ;;  %2519 = vmatpush3.bf16.msra.mxu1 %v1445_v24  ;;  %v2748_v24 = vld [vmem:[%s611_s2 + $0x8] sm:$0xff]  }
 0x4fc   : > { %2525 = vmatpush3.bf16.msra.mxu0 %v1493_v25  ;;  %2520 = vmatprep.mubr.msk.bf16.mxu1 %vm3241_vm1, %v3240_v3 }
 0x4fd   : > { %2526 = vmatprep.mubr.msk.bf16.mxu0 %vm3241_vm1, %v3240_v3  ;;  %2530 = vmatprep.subr.bf16.mxu1 %v3240_v3 }
 0x4fe   : > { %2536 = vmatprep.subr.bf16.mxu0 %v3240_v3 }
 0x505   : > { %1679 = vrot.lane.b32.xlu0 %v3829_v36, %s3246_s5 }
 0x543   : > { %v1302_v27 = vpop.xlane.xlu0 %1301 }
 0x544   : > { %2775 = vrcp.f32 %v1302_v27  ;;  %v1305_v28 = vpop.xlane.xlu1 %1304 }
 0x545   : > { %2777 = vrcp.f32 %v1305_v28 }
 0x547   : > { %v1584_v38 = vpop.permute.xlu0 %1583 }
 0x548   : > { %v1589_v36 = vsel %vm1347_vm4, %v1584_v38, 0 }
 0x54b   : > { %v1311_v29 = vpop.xlane.xlu1 %1310 }
 0x54c   : > { %2779 = vrcp.f32 %v1311_v29 }
 0x54e   : > { %v2776_v32 = vpop.eup %2775 }
 0x54f   : > { %v2778_v33 = vpop.eup %2777  ;;  %v1328_v34 = vmul.f32 %v2776_v32, %v3905_v55 }
 0x550   : > { %v1329_v37 = vmul.f32 %v2778_v33, %v3907_v56 }
 0x551   : > { %v1336_v39 = vpack.c.bf16 %v1328_v34, %v1328_v34 }
 0x552   : > { %v1337_v40 = vpack.c.bf16 %v1329_v37, %v1329_v37 }
 0x553   : > { %2521 = vmatmul.mubr.msk.bf16.vlgmr.msra.gmra.mrb[20].mxu1 %vm856_vm3, %v1336_v39  ;;  %v1317_v45 = vpop.xlane.xlu1 %1316 }
 0x554   : > { %2527 = vmatmul.mubr.msk.bf16.vlgmr.msra.gmra.mrb[24].mxu0 %vm856_vm3, %v1337_v40  ;;  %2531 = vmatpush3.bf16.msra.mxu1 %v1541_v41  ;;  %2781 = vrcp.f32 %v1317_v45 }
 0x555   : > { %2537 = vmatpush3.bf16.msra.mxu0 %v1589_v36  ;;  %2538 = vmatprep.mubr.msk.bf16.mxu0 %vm3241_vm1, %v3240_v3 }
 0x556   : > { %2548 = vmatprep.subr.bf16.mxu0 %v3240_v3  ;;  %2532 = vmatprep.mubr.msk.bf16.mxu1 %vm3241_vm1, %v3240_v3  ;;  %v2780_v42 = vpop.eup %2779 }
 0x557   : > { %2542 = vmatprep.subr.bf16.mxu1 %v3240_v3  ;;  %v1331_v43 = vmul.f32 %v2780_v42, %v3913_v61  ;;  %v1632_v53 = vpop.permute.xlu1 %1631 }
 0x558   : > { %v1637_v56 = vsel %vm1347_vm4, %v1632_v53, 0 }
 0x559   : > { %v1339_v44 = vpack.c.bf16 %v1331_v43, %v1331_v43 }
 0x55c   : > { %2539 = vmatmul.mubr.msk.bf16.vlgmr.msra.gmra.mrb[28].mxu0 %vm856_vm3, %v1339_v44 }
 0x55d   : > { %2550 = vmatprep.mubr.msk.bf16.mxu0 %vm3241_vm1, %v3240_v3 }
 0x55e   : > { %v2782_v47 = vpop.eup %2781 }
 0x55f   : > { %v1333_v23 = vmul.f32 %v2782_v47, %v3917_v63 }
 0x561   : > { %v1341_v51 = vpack.c.bf16 %v1333_v23, %v1333_v23 }
 0x578   : > { %v1308_v46 = vpop.xlane.xlu0 %1307 }
 0x579   : > { %2783 = vrcp.f32 %v1308_v46 }
 0x57c   : > { %v1314_v22 = vpop.xlane.xlu0 %1313 }
 0x57d   : > { %2785 = vrcp.f32 %v1314_v22 }
 0x580   : > { %v1680_v48 = vpop.permute.xlu0 %1679 }
 0x581   : > { %v1685_v49 = vsel %vm1347_vm4, %v1680_v48, 0 }
 0x582   : > { %2549 = vmatpush3.bf16.msra.mxu0 %v1685_v49 }
 0x583   : > { %v2784_v50 = vpop.eup %2783  ;;  %2562 = vmatprep.subr.bf16.mxu0 %v3240_v3 }
 0x584   : > { %v1330_v52 = vmul.f32 %v2784_v50, %v3927_v13 }
 0x585   : > { %2551 = vmatmul.mubr.msk.bf16.vlgmr.msra.gmra.mrb[32].mxu0 %vm856_vm3, %v1341_v51  ;;  %v2379_v51 = vld [vmem:[%s619_s10] ss:$0 sm:$0xff] }
 0x586   : > { %v1338_v54 = vpack.c.bf16 %v1330_v52, %v1330_v52  ;;  %2566 = vmatprep.mubr.msk.bf16.mxu0 %vm3241_vm1, %v3240_v3 }
 0x587   : > { %v2786_v55 = vpop.eup %2785 }
 0x588   : > { %2533 = vmatmul.mubr.msk.bf16.vlgmr.msra.gmra.mrb[24].mxu1 %vm856_vm3, %v1338_v54  ;;  %v1332_v57 = vmul.f32 %v2786_v55, %v3931_v12 }
 0x589   : > { %2543 = vmatpush3.bf16.msra.mxu1 %v1637_v56  ;;  %2544 = vmatprep.mubr.msk.bf16.mxu1 %vm3241_vm1, %v3240_v3 }
 0x58a   : > { %2554 = vmatprep.subr.bf16.mxu1 %v3240_v3  ;;  %v1340_v31 = vpack.c.bf16 %v1332_v57, %v1332_v57 }
 0x590   : > { %2545 = vmatmul.mubr.msk.bf16.vlgmr.msra.gmra.mrb[28].mxu1 %vm856_vm3, %v1340_v31 }
 0x591   : > { %2558 = vmatprep.mubr.msk.bf16.mxu1 %vm3241_vm1, %v3240_v3  ;;  %2555 = vmatpush3.bf16.msra.mxu1 %v2747_v16 }
 0x592   : > { %2556 = vmatprep.subr.bf16.mxu1 %v3240_v3 }
 0x595   : > { %2557 = vmatpush3.bf16.msra.mxu1 %v2748_v24  ;;  %v4015_v24 = vld [vmem:[%s635_s8] ss:$0 sm:$0xff] }
 0x596   : > { %2570 = vmatprep.subr.bf16.mxu1 %v3240_v3 }
 0x5cd   : > { %v1385_v58 = vpop.f32.mrb[16].mxu1 }
 0x5ce   : > { %v1433_v59 = vpop.f32.mrb[20].mxu0  ;;  %v2510_v60 = vpop.f32.mrb[17].mxu1 }
 0x5cf   : > { %v2516_v61 = vpop.f32.mrb[21].mxu0  ;;  %v1388_v62 = vpop.f32.mrb[18].mxu1 }
 0x5d0   : > { %v1436_v63 = vpop.f32.mrb[22].mxu0  ;;  %v2511_v0 = vpop.f32.mrb[19].mxu1 }
 0x5d1   : > { %v2517_v1 = vpop.f32.mrb[23].mxu0 }
 0x626   : > { %v1481_v2 = vpop.f32.mrb[20].mxu1 }
 0x627   : > { %v1529_v4 = vpop.f32.mrb[24].mxu0  ;;  %v2522_v7 = vpop.f32.mrb[21].mxu1 }
 0x628   : > { %v2730_v8 = vpack.i.bf16 %v1529_v4, %v1481_v2  ;;  %v2528_v9 = vpop.f32.mrb[25].mxu0  ;;  %v1484_v10 = vpop.f32.mrb[22].mxu1 }
 0x629   : > { %v1532_v11 = vpop.f32.mrb[26].mxu0  ;;  %v2523_v13 = vpop.f32.mrb[23].mxu1  ;;  %v2750_v9 = vld [vmem:[%s644_s1 + $0x8] sm:$0xff]  }
 0x62a   : > { %2731 = vrot.lane.b32.xlu1 %v2730_v8, %s3247_s14  ;;  %v2529_v14 = vpop.f32.mrb[27].mxu0  ;;  %v2749_v8 = vld [vmem:[%s644_s1] sm:$0xff]  }
 0x62b   : > { %2563 = vmatpush3.bf16.msra.mxu0 %v2749_v8  ;;  %v2751_v10 = vld [vmem:[%s3774_s24] sm:$0xff]   ;;  %v2752_v11 = vld [vmem:[%s3774_s24 + $0x8] sm:$0xff]  }
 0x62c   : > { %2564 = vmatprep.subr.bf16.mxu0 %v3240_v3 }
 0x62f   : > { %v1625_v15 = vpop.f32.mrb[28].mxu0  ;;  %2565 = vmatpush3.bf16.msra.mxu0 %v2750_v9 }
 0x630   : > { %v2540_v30 = vpop.f32.mrb[29].mxu0 }
 0x631   : > { %v1628_v12 = vpop.f32.mrb[30].mxu0 }
 0x632   : > { %v2541_v35 = vpop.f32.mrb[31].mxu0 }
 0x658   : > { %v1721_v17 = vpop.f32.mrb[32].mxu0 }
 0x659   : > { %v2552_v18 = vpop.f32.mrb[33].mxu0 }
 0x65a   : > { %v1724_v19 = vpop.f32.mrb[34].mxu0  ;;  %v4010_v18 = vld [vmem:[%s627_s25] ss:$0 sm:$0xff] }
 0x65b   : > { %v1577_v20 = vpop.f32.mrb[24].mxu1  ;;  %v2553_v21 = vpop.f32.mrb[35].mxu0 }
 0x65c   : > { %v2735_v25 = vpack.i.bf16 %v1625_v15, %v1577_v20  ;;  %v2534_v26 = vpop.f32.mrb[25].mxu1 }
 0x65d   : > { %v1580_v27 = vpop.f32.mrb[26].mxu1 }
 0x65e   : > { %v2535_v28 = vpop.f32.mrb[27].mxu1  ;;  %2736 = vrot.lane.b32.xlu0 %v2735_v25, %s3248_s0 }
 0x663   : > { %v1673_v29 = vpop.f32.mrb[28].mxu1 }
 0x664   : > { %v2740_v32 = vpack.i.bf16 %v1721_v17, %v1673_v29  ;;  %v2546_v33 = vpop.f32.mrb[29].mxu1  ;;  %v2753_v29 = vld [vmem:[%s3774_s24 + $0x10] sm:$0xff]  }
 0x665   : > { %v1676_v34 = vpop.f32.mrb[30].mxu1  ;;  %v2385_v33 = vld [vmem:[%s652_s17] ss:$0 sm:$0xff] }
 0x666   : > { %v2547_v37 = vpop.f32.mrb[31].mxu1  ;;  %2741 = vrot.lane.b32.xlu1 %v2740_v32, %s3249_s7  ;;  %v2754_v32 = vld [vmem:[%s3774_s24 + $0x18] sm:$0xff]  }
 0x69c   : > { %v2732_v38 = vpop.permute.xlu1 %2731 }
 0x69d   : > { %v2734_v40 = vunpack.i.h.bf16 %v2732_v38  ;;  %v2733_v41 = vunpack.i.l.bf16 %v2732_v38 }
 0x69f   : > { %v1752_v44 = vsel %vm856_vm3, %v1433_v59, %v2734_v40  ;;  %v1751_v45 = vsel %vm856_vm3, %v1385_v58, %v2733_v41 }
 0x6d0   : > { %v2737_v39 = vpop.permute.xlu0 %2736 }
 0x6d1   : > { %v2739_v36 = vunpack.i.h.bf16 %v2737_v39  ;;  %v2738_v42 = vunpack.i.l.bf16 %v2737_v39 }
 0x6d3   : > { %v1755_v22 = vsel %vm1753_vm5, %v1752_v44, %v2739_v36  ;;  %v1754_v23 = vsel %vm1753_vm5, %v1751_v45, %v2738_v42  ;;  %v2389_v44 = vld [vmem:[%s669_s16] ss:$0 sm:$0xff] }
 0x6d8   : > { %v2742_v43 = vpop.permute.xlu1 %2741 }
 0x6d9   : > { %v2744_v46 = vunpack.i.h.bf16 %v2742_v43  ;;  %v2743_v47 = vunpack.i.l.bf16 %v2742_v43 }
 0x6db   : > { %v1758_v48 = vsel %vm1756_vm6, %v1755_v22, %v2744_v46  ;;  %v1757_v49 = vsel %vm1756_vm6, %v1754_v23, %v2743_v47 }
 0x6dc   : > { %v1759_v50 = vpack.c.bf16 %v1758_v48, %v1757_v49 }
 0x6de   : > { %2559 = vmatmul.mubr.msk.bf16.vlgmr.msra.gmra.mrb[32].mxu1 %vm780_vm2, %v1759_v50 }
 0x6df   : > { %2578 = vmatprep.mubr.msk.bf16.mxu1 %vm3241_vm1, %v3240_v3  ;;  %2571 = vmatpush3.bf16.msra.mxu1 %v2751_v10 }
 0x6e0   : > { %2572 = vmatprep.subr.bf16.mxu1 %v3240_v3 }
 0x6e3   : > { %2573 = vmatpush3.bf16.msra.mxu1 %v2752_v11 }
 0x6e4   : > { %2574 = vmatprep.subr.bf16.mxu1 %v3240_v3 }
 0x6e7   : > { %2575 = vmatpush3.bf16.msra.mxu1 %v2753_v29 }
 0x6e8   : > { %2576 = vmatprep.subr.bf16.mxu1 %v3240_v3 }
 0x6eb   : > { %2577 = vmatpush3.bf16.msra.mxu1 %v2754_v32 }
 0x7b1   : > { %v1820_v52 = vpop.f32.mrb[32].mxu1 }
 0x7b2   : > { %v1821_v53 = vadd.f32 %v2379_v51, %v1820_v52  ;;  %v2560_v54 = vpop.f32.mrb[33].mxu1 }
 0x7b3   : > { %v1823_v55 = vpop.f32.mrb[34].mxu1 }
 0x7b4   : > { %v1824_v56 = vadd.f32 %v2379_v51, %v1823_v55  ;;  %v2561_v57 = vpop.f32.mrb[35].mxu1  ;;  %v1829_v31 = vadd.f32 %v1821_v53, %v3790_v5 }
 0x7b6   : > { %v1831_v58 = vsel %vm780_vm2, %v1829_v31, 0.0  ;;  %v1830_v59 = vadd.f32 %v1824_v56, %v3792_v6 }
 0x7b7   : > { %1832 = vadd.xlane.f32.xlu0 %v1831_v58 }
 0x7b8   : > { %v1834_v60 = vsel %vm780_vm2, %v1830_v59, 0.0 }
 0x7b9   : > { %1835 = vadd.xlane.f32.xlu1 %v1834_v60 }
 0x844   : > { %v1833_v61 = vpop.xlane.xlu0 %1832 }
 0x845   : > { %v1838_v62 = vmul.f32 0.03125, %v1833_v61 }
 0x846   : > { %v1836_v63 = vpop.xlane.xlu1 %1835 }
 0x847   : > { %v1840_v0 = vsub.f32 %v1829_v31, %v1838_v62  ;;  %v1839_v1 = vmul.f32 0.03125, %v1836_v63 }
 0x849   : > { %v1841_v2 = vsub.f32 %v1830_v59, %v1839_v1  ;;  %v1842_v4 = vmul.f32 %v1840_v0, %v1840_v0 }
 0x84b   : > { %v1844_v5 = vsel %vm780_vm2, %v1842_v4, 0.0  ;;  %v1843_v7 = vmul.f32 %v1841_v2, %v1841_v2 }
 0x84c   : > { %1845 = vadd.xlane.f32.xlu0 %v1844_v5 }
 0x84d   : > { %v1847_v6 = vsel %vm780_vm2, %v1843_v7, 0.0 }
 0x850   : > { %1848 = vadd.xlane.f32.xlu0 %v1847_v6 }
 0x8d9   : > { %v1846_v13 = vpop.xlane.xlu0 %1845 }
 0x8da   : > { %v1850_v14 = vmul.f32 0.03125, %v1846_v13 }
 0x8dc   : > { %v1852_v15 = vadd.f32 1e-06, %v1850_v14 }
 0x8dd   : > { %v1849_v30 = vpop.xlane.xlu0 %1848 }
 0x8de   : > { %2787 = vrsqrt.f32 %v1852_v15  ;;  %v1851_v12 = vmul.f32 0.03125, %v1849_v30 }
 0x8e0   : > { %v1853_v35 = vadd.f32 1e-06, %v1851_v12 }
 0x8e2   : > { %2789 = vrsqrt.f32 %v1853_v35 }
 0x8e8   : > { %v2788_v16 = vpop.eup %2787 }
 0x8e9   : > { %v1856_v17 = vmul.f32 %v2788_v16, %v1840_v0 }
 0x8eb   : > { %v1864_v20 = vmul.f32 %v4010_v18, %v1856_v17 }
 0x8ec   : > { %v2790_v19 = vpop.eup %2789 }
 0x8ed   : > { %v1857_v21 = vmul.f32 %v2790_v19, %v1841_v2  ;;  %v1872_v26 = vadd.f32 %v4015_v24, %v1864_v20 }
 0x8ef   : > { %v1865_v25 = vmul.f32 %v4010_v18, %v1857_v21 }
 0x8f1   : > { %v1873_v27 = vadd.f32 %v4015_v24, %v1865_v25 }
 0x8f3   : > { %v1874_v28 = vpack.c.bf16 %v1873_v27, %v1872_v26 }
 0x8f5   : > { %2567 = vmatmul.mubr.msk.bf16.vlgmr.msra.gmra.mrb[36].mxu0 %vm780_vm2, %v1874_v28 }
 0x9c8   : > { %v1935_v34 = vpop.f32.mrb[36].mxu0 }
 0x9c9   : > { %v1936_v37 = vadd.f32 %v2385_v33, %v1935_v34  ;;  %v2568_v38 = vpop.f32.mrb[37].mxu0 }
 0x9ca   : > { %v1938_v39 = vpop.f32.mrb[38].mxu0 }
 0x9cb   : > { %v1939_v40 = vadd.f32 %v2385_v33, %v1938_v39  ;;  %v2569_v41 = vpop.f32.mrb[39].mxu0  ;;  %v1942_v36 = vmax.f32 %v1936_v37, 0.0 }
 0x9cd   : > { %v1943_v42 = vmax.f32 %v1939_v40, 0.0 }
 0x9cf   : > { %v1944_v43 = vpack.c.bf16 %v1943_v42, %v1942_v36 }
 0x9d1   : > { %2579 = vmatmul.mubr.msk.bf16.vlgmr.msra.gmra.mrb[36].mxu1 %vm1984_vm7, %v1944_v43 }
 0xaa4   : > { %v2022_v45 = vpop.f32.mrb[36].mxu1 }
 0xaa5   : > { %v2023_v46 = vadd.f32 %v2389_v44, %v2022_v45  ;;  %v2580_v3 = vpop.f32.mrb[37].mxu1 }
 0xaa6   : > { %v2025_v47 = vpop.f32.mrb[38].mxu1 }
 0xaa7   : > { %v2026_v22 = vadd.f32 %v2389_v44, %v2025_v47  ;;  %v2581_v23 = vpop.f32.mrb[39].mxu1  ;;  %v2029_v48 = vadd.f32 %v2023_v46, %v1872_v26 }
 0xaa9   : > { %v2031_v49 = vsel %vm780_vm2, %v2029_v48, 0.0  ;;  %v2030_v50 = vadd.f32 %v2026_v22, %v1873_v27 }
 0xaaa   : > { %2032 = vadd.xlane.f32.xlu1 %v2031_v49 }
 0xaab   : > { %v2034_v51 = vsel %vm780_vm2, %v2030_v50, 0.0 }
 0xaac   : > { %2035 = vadd.xlane.f32.xlu0 %v2034_v51 }
 0xb37   : > { %v2033_v52 = vpop.xlane.xlu1 %2032 }
 0xb38   : > { %v2037_v53 = vmul.f32 0.03125, %v2033_v52 }
 0xb39   : > { %v2036_v54 = vpop.xlane.xlu0 %2035 }
 0xb3a   : > { %v2039_v55 = vsub.f32 %v2029_v48, %v2037_v53  ;;  %v2038_v56 = vmul.f32 0.03125, %v2036_v54 }
 0xb3c   : > { %v2040_v57 = vsub.f32 %v2030_v50, %v2038_v56  ;;  %v2041_v31 = vmul.f32 %v2039_v55, %v2039_v55 }
 0xb3e   : > { %v2043_v58 = vsel %vm780_vm2, %v2041_v31, 0.0  ;;  %v2042_v59 = vmul.f32 %v2040_v57, %v2040_v57 }
 0xb3f   : > { %2044 = vadd.xlane.f32.xlu1 %v2043_v58 }
 0xb40   : > { %v2046_v60 = vsel %vm780_vm2, %v2042_v59, 0.0 }
 0xb41   : > { %2047 = vadd.xlane.f32.xlu0 %v2046_v60 }
 0xbcc   : > { %v2045_v61 = vpop.xlane.xlu1 %2044 }
 0xbcd   : > { %v2049_v62 = vmul.f32 0.03125, %v2045_v61 }
 0xbce   : > { %v2048_v63 = vpop.xlane.xlu0 %2047 }
 0xbcf   : > { %v2051_v0 = vadd.f32 1e-06, %v2049_v62  ;;  %v2050_v1 = vmul.f32 0.03125, %v2048_v63 }
 0xbd1   : > { %2791 = vrsqrt.f32 %v2051_v0  ;;  %v2052_v2 = vadd.f32 1e-06, %v2050_v1 }
 0xbd3   : > { %2793 = vrsqrt.f32 %v2052_v2 }
 0xbdb   : > { %v2792_v4 = vpop.eup %2791 }
 0xbdc   : > { %v2055_v5 = vmul.f32 %v2792_v4, %v2039_v55 }
 0xbdd   : > { %v2794_v7 = vpop.eup %2793 }
 0xbde   : > { %v2057_v6 = vmul.f32 %v4010_v18, %v2055_v5  ;;  %v2056_v8 = vmul.f32 %v2794_v7, %v2040_v57  ;;  %2066 = sbr.rel (%p2395_p1) target bundleno = 3045 (0xbe5), region = 116 }
 0xbe0   : > { %v2059_v9 = vadd.f32 %v4015_v24, %v2057_v6  ;;  %v2058_v10 = vmul.f32 %v4010_v18, %v2056_v8 }
 0xbe2   : > { %2061 = vst.msk [vmem:[#allocation2] sm:$0xff] %vm780_vm2, %v2059_v9  ;;  %v2060_v11 = vadd.f32 %v4015_v24, %v2058_v10  ;;  %2067 = vst.msk [vmem:[#allocation21] sm:$0xff] (!%p2395_p1), %vm780_vm2, %v2059_v9 }
 0xbe4   : > { %2062 = vst.msk [vmem:[#allocation2 + $0x8] sm:$0xff] %vm780_vm2, %v2060_v11  ;;  %2068 = vst.msk [vmem:[#allocation21 + $0x8] sm:$0xff] (!%p2395_p1), %vm780_vm2, %v2060_v11 }
 0xbe5 PF: > { %p2648_p3 = scmp.eq.s32.totalorder %s3552_s19, 1  ;;  %s3250_s15 = smov [#allocation21]  }
 0xbe6   : > { %s2078_s2 = sshll.u32 %s3250_s15, 4  ;;  %s2079_s2 = int_to_ptr.vmem [resolvable:$true] %s2078_s2 }
 0xbe7   : > { %s3123_s10 = scalar_lea.vmem %s2079_s2, 256  ;;  %p3130_p11 = scmp.lt.s32.totalorder %s2079_s2, %s2079_s2 }
 0xbe8   : > { %p3124_p13 = scmp.ne.s32.totalorder %s2079_s2, %s3123_s10  ;;  %p3131_p5 = scmp.lt.s32.totalorder %s3123_s10, %s3123_s10 }
 0xbea   : > { %p3125_p12 = pnand %p3124_p13, %p2648_p3  ;;  %p3132_p0 = por %p3131_p5, %p3130_p11 }
 0xbec   : > { %p3126_p6 = pneg %p3125_p12 }
 0xbee   : > { %p3133_p4 = pnand %p3132_p0, %p3126_p6 }
 0xbf0   : > { %3136 = shalt.err (!%p3133_p4)
}
 0xbf1   : > { %s4160_s23 = sld [smem:[#allocation41_spill]] }
 0xbf7   : > { %s3137_s1 = scalar_lea.hbm %s4160_s23, 256 }
 0xbf8   : > { %p3138_p8 = scmp.ne.s32.totalorder %s4160_s23, %s3137_s1  ;;  %p3143_p9 = scmp.lt.u32.totalorder %s3137_s1, %s4160_s23 }
 0xbfa   : > { %p3139_p10 = pnand %p3138_p8, %p2648_p3 }
 0xbfc   : > { %p3140_p2 = pneg %p3139_p10 }
 0xbfe   : > { %p3145_p7 = pnand %p3143_p9, %p3140_p2 }
 0xc00   : > { %3148 = shalt.err (!%p3145_p7)
}
 0xc01   : > { %s3251_s16 = smov 128  }
 0xc02   : > { %2607 = dma.vmem_to_hbm [thread:$0]  (%p2648_p3), %s2079_s2, 256, %s4160_s23, [#allocation5], %s3251_s16, %s3251_s16, %s3247_s14  }
 0xc03   : > { %3198 = dma.done.wait (%p2648_p3), [#allocation5], 256  }
 0xc04   : > { %3200 = vsyncadd (%p2648_p3), [#allocation5], 4294967040 }
 0xc05 PF: > { %s38_s22 = sadd.s32 1, %s3223_s22   ;;  %s4161_s3 = sld [smem:[#allocation29_spill]] }
 0xc06   : > { %p35_p1 = scmp.ge.s32.totalorder %s38_s22, 4   ;;  %s4162_s19 = sld [smem:[#allocation32_spill]] }
 0xc07   : > { %s4163_s12 = sld [smem:[#allocation31_spill]]  ;;  %s4164_s17 = smov %s3207_s18 }
 0xc08   : > { %s4166_s20 = smov %s3219_s21  ;;  %37 = sbr.rel (!%p35_p1) target bundleno = 24 (0x18), region = 223 }
 0xc0b   : > { %s4165_s18 = smov %s4161_s3 }
 0xc0d   : > { %s4167_s21 = smov %s4163_s12 }
 0xc0f   :  { %2094 = vsyncpa [#allocation4], 1 }
 0xc10   :  { %2096 = vsyncpa [#allocation4 + $0x1], 1 }
 0xc11   :  { %2097 = vsyncpa [#allocation7], 1 }
 0xc12   :  { %2099 = vsyncpa [#allocation7 + $0x1], 1 }
 0xc13   :  { %2100 = vsyncpa [#allocation10], 1 }
 0xc14   :  { %2102 = vsyncpa [#allocation10 + $0x1], 1 }
 0xc15   :  { %2103 = vsyncpa [#allocation13], 1 }
 0xc16   :  { %2105 = vsyncpa [#allocation13 + $0x1], 1 }
 0xc17   :  { %2106 = vsyncpa [#allocation16], 1 }
 0xc18   :  { %2108 = vsyncpa [#allocation16 + $0x1], 1 }
 0xc19   :  { %2109 = vsyncpa [#allocation19], 1 }
 0xc1a   :  { %2111 = vsyncpa [#allocation19 + $0x1], 1 }
 0xc1b   :  { %2112 = vsyncpa [#allocation5], 1 }
 0xc1c   :  { %2114 = vsyncpa [#allocation5 + $0x1], 1 }

</bundles_post_ra>
